<compile_context>
chip_gen: v7x
topology: tpu7x:2x2x1
jax: 0.10.0
libtpu: 0.0.40
codegen_flags: <defaults>
</compile_context>

<pallas_src>
import functools
from typing import NamedTuple

import jax
import jax.numpy as jnp
from jax import lax
from jax.experimental import pallas as pl
from jax.experimental.pallas import tpu as pltpu

BN_EPS = 1e-5


# ------------------------------ small helpers -------------------------------

class ConvSpec(NamedTuple):
    kh: int
    kw: int
    cin: int
    cout: int
    stride: int
    pad: int


def _round_up(x, m):
    return (x + m - 1) // m * m


def _pad2d(a, rows, cols):
    r, c = a.shape
    if r == rows and c == cols:
        return a
    return jnp.pad(a, ((0, rows - r), (0, cols - c)))


def _pick_tile(total, candidates):
    for t in candidates:
        if total % t == 0:
            return t
    return candidates[-1]


def _im2col(x, kh, kw, stride, pad):
    """x: NHWC -> patches (N, OH, OW, kh*kw, C)."""
    # TODO(synk): implicit im2col (windowed DMA straight from the NHWC tensor
    # in HBM over a kh*kw 'arbitrary' grid axis) would remove the kh*kw read
    # amplification for Cin >= 64 layers; explicit bf16 patches are kept here
    # since the toy Cin is tiny and per-tap K would starve the MXU.
    N, H, W, C = x.shape
    xp = jnp.pad(x, ((0, 0), (pad, pad), (pad, pad), (0, 0)))
    OH = (H + 2 * pad - kh) // stride + 1
    OW = (W + 2 * pad - kw) // stride + 1
    cols = []
    for i in range(kh):
        for j in range(kw):
            cols.append(xp[:, i:i + stride * OH:stride, j:j + stride * OW:stride, :])
    patches = jnp.stack(cols, axis=3)  # (N, OH, OW, kh*kw, C)
    return patches, OH, OW


# ----------------------------- Pallas kernels -------------------------------

def _matmul_stats_kernel(p_ref, w_ref, y_ref, psum_ref, pssq_ref):
    """bf16 matmul accumulating directly into the resident f32 output block;
    emits per-(row-tile, channel) sum / sum-of-squares at the last k step."""
    k = pl.program_id(2)

    @pl.when(k == 0)
    def _():
        y_ref[...] = jnp.zeros_like(y_ref)

    y_ref[...] += jnp.dot(p_ref[...], w_ref[...],
                          preferred_element_type=jnp.float32)

    @pl.when(k == pl.num_programs(2) - 1)
    def _():
        y = y_ref[...]
        s = jnp.sum(y, axis=0, keepdims=True)        # (1, TN)
        ss = jnp.sum(y * y, axis=0, keepdims=True)   # (1, TN)
        psum_ref[...] = jnp.broadcast_to(s, psum_ref.shape)
        pssq_ref[...] = jnp.broadcast_to(ss, pssq_ref.shape)


def _bn_act_kernel(y_ref, s_ref, b_ref, o_ref, *, relu):
    out = y_ref[...] * s_ref[...] + b_ref[...]
    if relu:
        out = jnp.maximum(out, 0.0)
    o_ref[...] = out.astype(o_ref.dtype)


def _bn_res_act_kernel(y_ref, s_ref, b_ref, r_ref, o_ref, *, relu):
    out = y_ref[...] * s_ref[...] + b_ref[...] + r_ref[...]
    if relu:
        out = jnp.maximum(out, 0.0)
    o_ref[...] = out.astype(o_ref.dtype)


# ------------------------------ pallas_call glue -----------------------------

def _matmul_with_stats(p2d, w2d, tm, tn, tk):
    Mp, Kp = p2d.shape
    Cp = w2d.shape[1]
    gm, gn, gk = Mp // tm, Cp // tn, Kp // tk

    flops = 2 * Mp * Kp * Cp
    bytes_accessed = (Mp * Kp * 2 * gn + Kp * Cp * 2 * gm
                      + Mp * Cp * 4 + 2 * gm * 8 * Cp * 4)
    tile_bytes = 2 * (tm * tk * 2 + tk * tn * 2 + tm * tn * 4 + 2 * 8 * tn * 4)
    vmem_limit = int(min(max(2 * tile_bytes, 16 << 20), 32 << 20))

    grid_spec = pltpu.PrefetchScalarGridSpec(
        num_scalar_prefetch=0,
        grid=(gm, gn, gk),
        in_specs=[pl.BlockSpec((tm, tk), lambda i, j, k: (i, k)),
                  pl.BlockSpec((tk, tn), lambda i, j, k: (k, j))],
        out_specs=(pl.BlockSpec((tm, tn), lambda i, j, k: (i, j)),
                   pl.BlockSpec((1, 8, tn), lambda i, j, k: (i, 0, j)),
                   pl.BlockSpec((1, 8, tn), lambda i, j, k: (i, 0, j))),
    )
    y, psum, pssq = pl.pallas_call(
        _matmul_stats_kernel,
        grid_spec=grid_spec,
        out_shape=(jax.ShapeDtypeStruct((Mp, Cp), jnp.float32),
                   jax.ShapeDtypeStruct((gm, 8, Cp), jnp.float32),
                   jax.ShapeDtypeStruct((gm, 8, Cp), jnp.float32)),
        compiler_params=pltpu.CompilerParams(
            dimension_semantics=("parallel", "parallel", "arbitrary"),
            vmem_limit_bytes=vmem_limit),
        cost_estimate=pl.CostEstimate(flops=flops, transcendentals=0,
                                      bytes_accessed=bytes_accessed),
    )(p2d, w2d)
    return y, psum[:, 0, :], pssq[:, 0, :]


def _bn_act(y, scale, shift, residual, relu, tm, tn, out_dtype):
    Mp, Cp = y.shape
    gm, gn = Mp // tm, Cp // tn

    inputs = [y, scale, shift]
    in_specs = [pl.BlockSpec((tm, tn), lambda i, j: (i, j)),
                pl.BlockSpec((1, tn), lambda i, j: (0, j)),
                pl.BlockSpec((1, tn), lambda i, j: (0, j))]
    if residual is not None:
        inputs.append(residual)
        in_specs.append(pl.BlockSpec((tm, tn), lambda i, j: (i, j)))
        kernel = functools.partial(_bn_res_act_kernel, relu=relu)
    else:
        kernel = functools.partial(_bn_act_kernel, relu=relu)

    out_bytes = jnp.dtype(out_dtype).itemsize
    res_bytes = 2 if residual is not None else 0
    tile_bytes = 2 * (tm * tn * (4 + res_bytes + out_bytes) + 2 * tn * 4)
    vmem_limit = int(min(max(2 * tile_bytes, 16 << 20), 32 << 20))
    bytes_accessed = Mp * Cp * (4 + res_bytes + out_bytes) + 2 * Cp * 4

    grid_spec = pltpu.PrefetchScalarGridSpec(
        num_scalar_prefetch=0,
        grid=(gm, gn),
        in_specs=in_specs,
        out_specs=pl.BlockSpec((tm, tn), lambda i, j: (i, j)),
    )
    return pl.pallas_call(
        kernel,
        grid_spec=grid_spec,
        out_shape=jax.ShapeDtypeStruct((Mp, Cp), out_dtype),
        compiler_params=pltpu.CompilerParams(
            dimension_semantics=("parallel", "parallel"),
            vmem_limit_bytes=vmem_limit),
        cost_estimate=pl.CostEstimate(flops=3 * Mp * Cp, transcendentals=0,
                                      bytes_accessed=bytes_accessed),
    )(*inputs)


# --------------------------- fused conv + BN (+res) --------------------------

def conv_bn_act(x_nhwc, w_packed, gamma_p, beta_p, *, spec, residual=None,
                relu=True, out_dtype=jnp.float32):
    """x_nhwc: NHWC (f32 or bf16).  w_packed: pre-packed (Kp, Cp) bf16 weights.
    gamma_p/beta_p: f32 BN affine params padded to Cp.
    BatchNorm uses training-mode batch statistics (nn.BatchNorm2d default).
    `residual` (NHWC, same output shape) is added before the final activation."""
    kh, kw, cin, cout, stride, pad = spec
    N = x_nhwc.shape[0]
    Kp, Cp = w_packed.shape
    K = kh * kw * cin

    patches, OH, OW = _im2col(x_nhwc.astype(jnp.bfloat16), kh, kw, stride, pad)
    M = N * OH * OW
    p2d = patches.reshape(M, K)

    # Tile geometry: gn = 1 whenever Cp <= 512 (patch matrix streams once),
    # TK the largest 128-multiple tile dividing Kp, TM up to 512 (16-aligned).
    TN = Cp if Cp <= 512 else (256 if Cp % 256 == 0 else 128)
    TK = Kp if Kp <= 512 else _pick_tile(Kp, (512, 384, 256, 128))
    TM = min(512, _round_up(M, 16))
    Mp = _round_up(M, TM)

    p2d = _pad2d(p2d, Mp, Kp)

    y, psum, pssq = _matmul_with_stats(p2d, w_packed, TM, TN, TK)

    # One-pass batch statistics in f32 over the true M rows; padded rows and
    # padded channels are all-zero so they contribute nothing to the sums.
    # TODO(synk): E[y^2]-E[y]^2 can cancel when |mean| >> std; switch to a
    # shifted/Welford accumulation if BN stats must match PyTorch bit-tightly.
    mean = jnp.sum(psum, axis=0) / M
    var = jnp.maximum(jnp.sum(pssq, axis=0) / M - mean * mean, 0.0)
    scale = gamma_p * lax.rsqrt(var + BN_EPS)
    shift = beta_p - mean * scale

    r2d = None
    if residual is not None:
        r2d = _pad2d(residual.astype(jnp.bfloat16).reshape(M, cout), Mp, Cp)

    TN_EP = Cp if Cp <= 512 else _pick_tile(Cp, (512, 256, 128))
    out = _bn_act(y, scale.reshape(1, Cp), shift.reshape(1, Cp), r2d,
                  relu, TM, TN_EP, out_dtype)
    return out[:M, :cout].reshape(N, OH, OW, cout)


# --------------------------------- BasicBlock --------------------------------

def _conv_w(key, cout, cin, kh, kw):
    fan_in = cin * kh * kw
    bound = 1.0 / (fan_in ** 0.5)
    return jax.random.uniform(key, (cout, cin, kh, kw), jnp.float32, -bound, bound)


def init_basic_block_params(key, in_ch, out_ch, *, downsample=False, expansion=1):
    ks = jax.random.split(key, 3)
    p = {
        "conv1_w": _conv_w(ks[0], out_ch, in_ch, 3, 3),
        "bn1_g": jnp.ones((out_ch,), jnp.float32),
        "bn1_b": jnp.zeros((out_ch,), jnp.float32),
        "conv2_w": _conv_w(ks[1], out_ch * expansion, out_ch, 3, 3),
        "bn2_g": jnp.ones((out_ch * expansion,), jnp.float32),
        "bn2_b": jnp.zeros((out_ch * expansion,), jnp.float32),
    }
    if downsample:  # standard ResNet projection shortcut: 1x1 conv + BN
        p["ds_w"] = _conv_w(ks[2], out_ch * expansion, in_ch, 1, 1)
        p["ds_g"] = jnp.ones((out_ch * expansion,), jnp.float32)
        p["ds_b"] = jnp.zeros((out_ch * expansion,), jnp.float32)
    return p


def prepare_basic_block(p, *, stride):
    """Pack/pad weights and BN params once, OUTSIDE the jitted per-call path."""
    def pack_w(w_pt):
        cout, cin, kh, kw = w_pt.shape
        K = kh * kw * cin
        Kp = _round_up(K, 128)
        Cp = _round_up(cout, 128)
        w2d = jnp.transpose(w_pt, (2, 3, 1, 0)).reshape(K, cout)
        return _pad2d(w2d.astype(jnp.bfloat16), Kp, Cp)

    def pack_bn(g, b, cout):
        Cp = _round_up(cout, 128)
        return (jnp.pad(g.astype(jnp.float32), (0, Cp - cout)),
                jnp.pad(b.astype(jnp.float32), (0, Cp - cout)))

    cout1, cin1, kh1, kw1 = p["conv1_w"].shape
    cout2, cin2, kh2, kw2 = p["conv2_w"].shape
    packed = {"w1": pack_w(p["conv1_w"]), "w2": pack_w(p["conv2_w"])}
    packed["g1"], packed["b1"] = pack_bn(p["bn1_g"], p["bn1_b"], cout1)
    packed["g2"], packed["b2"] = pack_bn(p["bn2_g"], p["bn2_b"], cout2)
    specs = {
        "conv1": ConvSpec(kh1, kw1, cin1, cout1, stride, 1),
        "conv2": ConvSpec(kh2, kw2, cin2, cout2, 1, 1),
        "ds": None,
    }
    if "ds_w" in p:
        coutd, cind, khd, kwd = p["ds_w"].shape
        packed["wd"] = pack_w(p["ds_w"])
        packed["gd"], packed["bd"] = pack_bn(p["ds_g"], p["ds_b"], coutd)
        specs["ds"] = ConvSpec(khd, kwd, cind, coutd, stride, 0)
    return packed, specs


def basic_block(x_nhwc, packed, specs):
    # Intermediates are bf16 (next conv casts to bf16 for im2col anyway);
    # only the final block output is f32.
    out = conv_bn_act(x_nhwc, packed["w1"], packed["g1"], packed["b1"],
                      spec=specs["conv1"], relu=True, out_dtype=jnp.bfloat16)
    if specs["ds"] is not None:
        identity = conv_bn_act(x_nhwc, packed["wd"], packed["gd"], packed["bd"],
                               spec=specs["ds"], relu=False,
                               out_dtype=jnp.bfloat16)
    else:
        identity = x_nhwc.astype(jnp.bfloat16)
    out = conv_bn_act(out, packed["w2"], packed["g2"], packed["b2"],
                      spec=specs["conv2"], residual=identity, relu=True,
                      out_dtype=jnp.float32)
    return out


def basic_block_forward(x_nchw, packed, *, specs):
    x = jnp.transpose(x_nchw.astype(jnp.float32), (0, 2, 3, 1))  # NCHW -> NHWC
    y = basic_block(x, packed, specs)
    return jnp.transpose(y, (0, 3, 1, 2))                        # NHWC -> NCHW


# ------------------------------------ main ------------------------------------

if __name__ == "__main__":
    key = jax.random.PRNGKey(0)
    kx, kp1, kp2 = jax.random.split(key, 3)
    x = jax.random.normal(kx, (2, 4, 16, 16), jnp.float32)   # NCHW, like PyTorch

    # identity-shortcut block: in == out channels, stride 1, no downsample
    p_id = init_basic_block_params(kp1, 4, 4, downsample=False)
    # projection-shortcut block: 4 -> 8 channels, stride 2, 1x1-conv downsample
    p_ds = init_basic_block_params(kp2, 4, 8, downsample=True)

    # one-time weight packing, hoisted out of the jitted per-call path
    packed_id, specs_id = prepare_basic_block(p_id, stride=1)
    packed_ds, specs_ds = prepare_basic_block(p_ds, stride=2)

    fwd_id = jax.jit(functools.partial(basic_block_forward, specs=specs_id))
    fwd_ds = jax.jit(functools.partial(basic_block_forward, specs=specs_ds))

    y1 = jax.block_until_ready(fwd_id(x, packed_id))
    y2 = jax.block_until_ready(fwd_ds(x, packed_ds))

    assert y1.shape == (2, 4, 16, 16), y1.shape
    assert y2.shape == (2, 8, 8, 8), y2.shape
    assert bool(jnp.all(jnp.isfinite(y1))) and bool(jnp.all(jnp.isfinite(y2)))
    assert bool(jnp.all(y1 >= 0.0)) and bool(jnp.all(y2 >= 0.0))  # final ReLU
    print("KERNEL_OK")
</pallas_src>

<mosaic_0001>
module attributes {stable_mosaic.version = 11 : i64} {
  func.func @_matmul_stats_kernel(%arg0: i32, %arg1: i32, %arg2: i32, %arg3: memref<512x128xbf16, #tpu.memory_space<vmem>>, %arg4: memref<128x128xbf16, #tpu.memory_space<vmem>>, %arg5: memref<512x128xf32, #tpu.memory_space<vmem>>, %arg6: memref<1x8x128xf32, #tpu.memory_space<vmem>>, %arg7: memref<1x8x128xf32, #tpu.memory_space<vmem>>) attributes {dimension_semantics = [#tpu.dimension_semantics<parallel>, #tpu.dimension_semantics<parallel>, #tpu.dimension_semantics<arbitrary>], iteration_bounds = array<i64: 1, 1, 1>, scalar_prefetch = 0 : i64, scratch_operands = 0 : i64, tpu.core_type = #tpu.core_type<tc>, window_params = [{transform_indices = @transform_0, window_bounds = array<i64: 512, 128>}, {transform_indices = @transform_1, window_bounds = array<i64: 128, 128>}, {transform_indices = @transform_2, window_bounds = array<i64: 512, 128>}, {transform_indices = @transform_3, window_bounds = array<i64: 1, 8, 128>}, {transform_indices = @transform_4, window_bounds = array<i64: 1, 8, 128>}]} {
    %c0_i32 = arith.constant 0 : i32
    %0 = arith.cmpi eq, %arg2, %c0_i32 : i32
    %1 = arith.extui %0 : i1 to i32
    %c0_i32_0 = arith.constant 0 : i32
    %2 = arith.cmpi ne, %1, %c0_i32_0 : i32
    scf.if %2 {
      %cst_10 = arith.constant 0.000000e+00 : f32
      %12 = vector.broadcast %cst_10 : f32 to vector<512x128xf32>
      %c0_11 = arith.constant 0 : index
      %c0_12 = arith.constant 0 : index
      %13 = vector.load %arg5[%c0_11, %c0_12] : memref<512x128xf32, #tpu.memory_space<vmem>>, vector<512x128xf32>
      tpu.vector_store %arg5[%c0_11, %c0_12], %12 {strides = array<i32>} : memref<512x128xf32, #tpu.memory_space<vmem>>, vector<512x128xf32>,
    } else {
    }
    %c0 = arith.constant 0 : index
    %c0_1 = arith.constant 0 : index
    %3 = vector.load %arg5[%c0, %c0_1] : memref<512x128xf32, #tpu.memory_space<vmem>>, vector<512x128xf32>
    %c0_2 = arith.constant 0 : index
    %c0_3 = arith.constant 0 : index
    %4 = vector.load %arg3[%c0_2, %c0_3] : memref<512x128xbf16, #tpu.memory_space<vmem>>, vector<512x128xbf16>
    %c0_4 = arith.constant 0 : index
    %c0_5 = arith.constant 0 : index
    %5 = vector.load %arg4[%c0_4, %c0_5] : memref<128x128xbf16, #tpu.memory_space<vmem>>, vector<128x128xbf16>
    %cst = arith.constant dense<0.000000e+00> : vector<512x128xf32>
    %6 = tpu.matmul %4, %5, %cst {dimension_numbers = #tpu.dot_dimension_numbers<[1], [0], [0], [1], [0, 0, 1, 1], [], []>} : vector<512x128xbf16>, vector<128x128xbf16>, vector<512x128xf32> -> vector<512x128xf32>
    %7 = arith.addf %3, %6 : vector<512x128xf32>
    %c0_6 = arith.constant 0 : index
    %c0_7 = arith.constant 0 : index
    %8 = vector.load %arg5[%c0_6, %c0_7] : memref<512x128xf32, #tpu.memory_space<vmem>>, vector<512x128xf32>
    tpu.vector_store %arg5[%c0_6, %c0_7], %7 {strides = array<i32>} : memref<512x128xf32, #tpu.memory_space<vmem>>, vector<512x128xf32>,
    %c0_i32_8 = arith.constant 0 : i32
    %9 = arith.cmpi eq, %arg2, %c0_i32_8 : i32
    %10 = arith.extui %9 : i1 to i32
    %c0_i32_9 = arith.constant 0 : i32
    %11 = arith.cmpi ne, %10, %c0_i32_9 : i32
    scf.if %11 {
      %c0_10 = arith.constant 0 : index
      %c0_11 = arith.constant 0 : index
      %12 = vector.load %arg5[%c0_10, %c0_11] : memref<512x128xf32, #tpu.memory_space<vmem>>, vector<512x128xf32>
      %cst_12 = arith.constant dense<0.000000e+00> : vector<128xf32>
      %13 = vector.multi_reduction <add>, %12, %cst_12 [0] : vector<512x128xf32> to vector<128xf32>
      %14 = vector.shape_cast %13 : vector<128xf32> to vector<1x128xf32>
      %15 = arith.mulf %12, %12 : vector<512x128xf32>
      %cst_13 = arith.constant dense<0.000000e+00> : vector<128xf32>
      %16 = vector.multi_reduction <add>, %15, %cst_13 [0] : vector<512x128xf32> to vector<128xf32>
      %17 = vector.shape_cast %16 : vector<128xf32> to vector<1x128xf32>
      %18 = vector.shape_cast %14 : vector<1x128xf32> to vector<1x1x128xf32>
      %19 = vector.broadcast %18 : vector<1x1x128xf32> to vector<1x8x128xf32>
      %c0_14 = arith.constant 0 : index
      %c0_15 = arith.constant 0 : index
      %c0_16 = arith.constant 0 : index
      %20 = vector.load %arg6[%c0_14, %c0_15, %c0_16] : memref<1x8x128xf32, #tpu.memory_space<vmem>>, vector<1x8x128xf32>
      tpu.vector_store %arg6[%c0_14, %c0_15, %c0_16], %19 {strides = array<i32>} : memref<1x8x128xf32, #tpu.memory_space<vmem>>, vector<1x8x128xf32>,
      %21 = vector.shape_cast %17 : vector<1x128xf32> to vector<1x1x128xf32>
      %22 = vector.broadcast %21 : vector<1x1x128xf32> to vector<1x8x128xf32>
      %c0_17 = arith.constant 0 : index
      %c0_18 = arith.constant 0 : index
      %c0_19 = arith.constant 0 : index
      %23 = vector.load %arg7[%c0_17, %c0_18, %c0_19] : memref<1x8x128xf32, #tpu.memory_space<vmem>>, vector<1x8x128xf32>
      tpu.vector_store %arg7[%c0_17, %c0_18, %c0_19], %22 {strides = array<i32>} : memref<1x8x128xf32, #tpu.memory_space<vmem>>, vector<1x8x128xf32>,
    } else {
    }
    return
  }
  func.func @transform_0(%arg0: i32, %arg1: i32, %arg2: i32) -> (i32, i32) {
    %c0_i32 = arith.constant 0 : i32
    return %arg0, %arg2 : i32, i32
  }
  func.func @transform_1(%arg0: i32, %arg1: i32, %arg2: i32) -> (i32, i32) {
    %c0_i32 = arith.constant 0 : i32
    return %arg2, %arg1 : i32, i32
  }
  func.func @transform_2(%arg0: i32, %arg1: i32, %arg2: i32) -> (i32, i32) {
    %c0_i32 = arith.constant 0 : i32
    return %arg0, %arg1 : i32, i32
  }
  func.func @transform_3(%arg0: i32, %arg1: i32, %arg2: i32) -> (i32, i32, i32) {
    %c0_i32 = arith.constant 0 : i32
    %c0_i32_0 = arith.constant 0 : i32
    return %arg0, %c0_i32, %arg1 : i32, i32, i32
  }
  func.func @transform_4(%arg0: i32, %arg1: i32, %arg2: i32) -> (i32, i32, i32) {
    %c0_i32 = arith.constant 0 : i32
    %c0_i32_0 = arith.constant 0 : i32
    return %arg0, %c0_i32, %arg1 : i32, i32, i32
  }
}

module attributes {stable_mosaic.version = 11 : i64} {
  func.func @_bn_act_kernel(%arg0: i32, %arg1: i32, %arg2: memref<512x128xf32, #tpu.memory_space<vmem>>, %arg3: memref<1x128xf32, #tpu.memory_space<vmem>>, %arg4: memref<1x128xf32, #tpu.memory_space<vmem>>, %arg5: memref<512x128xbf16, #tpu.memory_space<vmem>>) attributes {dimension_semantics = [#tpu.dimension_semantics<parallel>, #tpu.dimension_semantics<parallel>], iteration_bounds = array<i64: 1, 1>, scalar_prefetch = 0 : i64, scratch_operands = 0 : i64, tpu.core_type = #tpu.core_type<tc>, window_params = [{transform_indices = @transform_0, window_bounds = array<i64: 512, 128>}, {transform_indices = @transform_1, window_bounds = array<i64: 1, 128>}, {transform_indices = @transform_2, window_bounds = array<i64: 1, 128>}, {transform_indices = @transform_3, window_bounds = array<i64: 512, 128>}]} {
    %c0 = arith.constant 0 : index
    %c0_0 = arith.constant 0 : index
    %0 = vector.load %arg2[%c0, %c0_0] : memref<512x128xf32, #tpu.memory_space<vmem>>, vector<512x128xf32>
    %c0_1 = arith.constant 0 : index
    %c0_2 = arith.constant 0 : index
    %1 = vector.load %arg3[%c0_1, %c0_2] : memref<1x128xf32, #tpu.memory_space<vmem>>, vector<1x128xf32>
    %2 = vector.broadcast %1 : vector<1x128xf32> to vector<512x128xf32>
    %3 = arith.mulf %0, %2 : vector<512x128xf32>
    %c0_3 = arith.constant 0 : index
    %c0_4 = arith.constant 0 : index
    %4 = vector.load %arg4[%c0_3, %c0_4] : memref<1x128xf32, #tpu.memory_space<vmem>>, vector<1x128xf32>
    %5 = vector.broadcast %4 : vector<1x128xf32> to vector<512x128xf32>
    %6 = arith.addf %3, %5 : vector<512x128xf32>
    %cst = arith.constant 0.000000e+00 : f32
    %7 = vector.broadcast %cst : f32 to vector<512x128xf32>
    %8 = arith.maximumf %6, %7 : vector<512x128xf32>
    %9 = arith.truncf %8 : vector<512x128xf32> to vector<512x128xbf16>
    %c0_5 = arith.constant 0 : index
    %c0_6 = arith.constant 0 : index
    %10 = vector.load %arg5[%c0_5, %c0_6] : memref<512x128xbf16, #tpu.memory_space<vmem>>, vector<512x128xbf16>
    tpu.vector_store %arg5[%c0_5, %c0_6], %9 {strides = array<i32>} : memref<512x128xbf16, #tpu.memory_space<vmem>>, vector<512x128xbf16>,
    return
  }
  func.func @transform_0(%arg0: i32, %arg1: i32) -> (i32, i32) {
    %c0_i32 = arith.constant 0 : i32
    return %arg0, %arg1 : i32, i32
  }
  func.func @transform_1(%arg0: i32, %arg1: i32) -> (i32, i32) {
    %c0_i32 = arith.constant 0 : i32
    %c0_i32_0 = arith.constant 0 : i32
    return %c0_i32, %arg1 : i32, i32
  }
  func.func @transform_2(%arg0: i32, %arg1: i32) -> (i32, i32) {
    %c0_i32 = arith.constant 0 : i32
    %c0_i32_0 = arith.constant 0 : i32
    return %c0_i32, %arg1 : i32, i32
  }
  func.func @transform_3(%arg0: i32, %arg1: i32) -> (i32, i32) {
    %c0_i32 = arith.constant 0 : i32
    return %arg0, %arg1 : i32, i32
  }
}

module attributes {stable_mosaic.version = 11 : i64} {
  func.func @_bn_res_act_kernel(%arg0: i32, %arg1: i32, %arg2: memref<512x128xf32, #tpu.memory_space<vmem>>, %arg3: memref<1x128xf32, #tpu.memory_space<vmem>>, %arg4: memref<1x128xf32, #tpu.memory_space<vmem>>, %arg5: memref<512x128xbf16, #tpu.memory_space<vmem>>, %arg6: memref<512x128xf32, #tpu.memory_space<vmem>>) attributes {dimension_semantics = [#tpu.dimension_semantics<parallel>, #tpu.dimension_semantics<parallel>], iteration_bounds = array<i64: 1, 1>, scalar_prefetch = 0 : i64, scratch_operands = 0 : i64, tpu.core_type = #tpu.core_type<tc>, window_params = [{transform_indices = @transform_0, window_bounds = array<i64: 512, 128>}, {transform_indices = @transform_1, window_bounds = array<i64: 1, 128>}, {transform_indices = @transform_2, window_bounds = array<i64: 1, 128>}, {transform_indices = @transform_3, window_bounds = array<i64: 512, 128>}, {transform_indices = @transform_4, window_bounds = array<i64: 512, 128>}]} {
    %c0 = arith.constant 0 : index
    %c0_0 = arith.constant 0 : index
    %0 = vector.load %arg2[%c0, %c0_0] : memref<512x128xf32, #tpu.memory_space<vmem>>, vector<512x128xf32>
    %c0_1 = arith.constant 0 : index
    %c0_2 = arith.constant 0 : index
    %1 = vector.load %arg3[%c0_1, %c0_2] : memref<1x128xf32, #tpu.memory_space<vmem>>, vector<1x128xf32>
    %2 = vector.broadcast %1 : vector<1x128xf32> to vector<512x128xf32>
    %3 = arith.mulf %0, %2 : vector<512x128xf32>
    %c0_3 = arith.constant 0 : index
    %c0_4 = arith.constant 0 : index
    %4 = vector.load %arg4[%c0_3, %c0_4] : memref<1x128xf32, #tpu.memory_space<vmem>>, vector<1x128xf32>
    %5 = vector.broadcast %4 : vector<1x128xf32> to vector<512x128xf32>
    %6 = arith.addf %3, %5 : vector<512x128xf32>
    %c0_5 = arith.constant 0 : index
    %c0_6 = arith.constant 0 : index
    %7 = vector.load %arg5[%c0_5, %c0_6] : memref<512x128xbf16, #tpu.memory_space<vmem>>, vector<512x128xbf16>
    %8 = arith.extf %7 : vector<512x128xbf16> to vector<512x128xf32>
    %9 = arith.addf %6, %8 : vector<512x128xf32>
    %cst = arith.constant 0.000000e+00 : f32
    %10 = vector.broadcast %cst : f32 to vector<512x128xf32>
    %11 = arith.maximumf %9, %10 : vector<512x128xf32>
    %c0_7 = arith.constant 0 : index
    %c0_8 = arith.constant 0 : index
    %12 = vector.load %arg6[%c0_7, %c0_8] : memref<512x128xf32, #tpu.memory_space<vmem>>, vector<512x128xf32>
    tpu.vector_store %arg6[%c0_7, %c0_8], %11 {strides = array<i32>} : memref<512x128xf32, #tpu.memory_space<vmem>>, vector<512x128xf32>,
    return
  }
  func.func @transform_0(%arg0: i32, %arg1: i32) -> (i32, i32) {
    %c0_i32 = arith.constant 0 : i32
    return %arg0, %arg1 : i32, i32
  }
  func.func @transform_1(%arg0: i32, %arg1: i32) -> (i32, i32) {
    %c0_i32 = arith.constant 0 : i32
    %c0_i32_0 = arith.constant 0 : i32
    return %c0_i32, %arg1 : i32, i32
  }
  func.func @transform_2(%arg0: i32, %arg1: i32) -> (i32, i32) {
    %c0_i32 = arith.constant 0 : i32
    %c0_i32_0 = arith.constant 0 : i32
    return %c0_i32, %arg1 : i32, i32
  }
  func.func @transform_3(%arg0: i32, %arg1: i32) -> (i32, i32) {
    %c0_i32 = arith.constant 0 : i32
    return %arg0, %arg1 : i32, i32
  }
  func.func @transform_4(%arg0: i32, %arg1: i32) -> (i32, i32) {
    %c0_i32 = arith.constant 0 : i32
    return %arg0, %arg1 : i32, i32
  }
}

</mosaic_0001>

<bundles_post_ra>
// kernel: basic_block_forward.5
= control target key start
LH: loop header
LB: loop body
LE: loop exit
PB: predicated region body
PF: predicated region fallthrough
CT: control target
= control target key end

     0   :  { %s1375_s0 = inlined_call_operand.vmem [shape: f32[512,128], index: 0, kind: input, shape index: {}]   ;;  %s1376_s1 = inlined_call_operand.vmem [shape: f32[1,128], index: 1, kind: input, shape index: {}]   ;;  %s1377_s2 = inlined_call_operand.vmem [shape: f32[1,128], index: 2, kind: input, shape index: {}]   ;;  %s1378_s3 = inlined_call_operand.vmem [shape: bf16[512,128], index: 3, kind: output, shape index: {}]  }
   0x1   :  { %v14_v0 = vld [vmem:[%s1375_s0] sm:$0xff]  ;;  %v15_v1 = vld [vmem:[%s1375_s0 + $0x8] sm:$0xff]  ;;  %v16_v6 = vld [vmem:[%s1375_s0 + $0x10] sm:$0xff] }
   0x2   :  { %v958_v2 = vld [vmem:[%s1376_s1] ss:$0 sm:$0xff]  ;;  %v17_v7 = vld [vmem:[%s1375_s0 + $0x18] sm:$0xff]  ;;  %v19_v11 = vld [vmem:[%s1375_s0 + $0x28] sm:$0xff] }
   0x3   :  { %v85_v3 = vmul.f32 %v958_v2, %v14_v0  ;;  %v86_v4 = vmul.f32 %v958_v2, %v15_v1  ;;  %v965_v5 = vld [vmem:[%s1377_s2] ss:$0 sm:$0xff]  ;;  %v87_v8 = vmul.f32 %v958_v2, %v16_v6  ;;  %v88_v9 = vmul.f32 %v958_v2, %v17_v7  ;;  %v20_v12 = vld [vmem:[%s1375_s0 + $0x30] sm:$0xff]  ;;  %v21_v17 = vld [vmem:[%s1375_s0 + $0x38] sm:$0xff] }
   0x4   :  { %v18_v10 = vld [vmem:[%s1375_s0 + $0x20] sm:$0xff]  ;;  %v90_v16 = vmul.f32 %v958_v2, %v19_v11  ;;  %v91_v20 = vmul.f32 %v958_v2, %v20_v12  ;;  %v92_v21 = vmul.f32 %v958_v2, %v21_v17  ;;  %v23_v27 = vld [vmem:[%s1375_s0 + $0x48] sm:$0xff]  ;;  %v24_v32 = vld [vmem:[%s1375_s0 + $0x50] sm:$0xff] }
   0x5   :  { %v156_v13 = vadd.f32 %v965_v5, %v85_v3  ;;  %v157_v14 = vadd.f32 %v965_v5, %v86_v4  ;;  %v89_v15 = vmul.f32 %v958_v2, %v18_v10  ;;  %v158_v18 = vadd.f32 %v965_v5, %v87_v8  ;;  %v22_v22 = vld [vmem:[%s1375_s0 + $0x40] sm:$0xff]  ;;  %v25_v33 = vld [vmem:[%s1375_s0 + $0x58] sm:$0xff]  ;;  %v27_v39 = vld [vmem:[%s1375_s0 + $0x68] sm:$0xff] }
   0x6   :  { %v159_v19 = vadd.f32 %v965_v5, %v88_v9  ;;  %v161_v26 = vadd.f32 %v965_v5, %v90_v16  ;;  %v162_v30 = vadd.f32 %v965_v5, %v91_v20  ;;  %v163_v31 = vadd.f32 %v965_v5, %v92_v21  ;;  %v26_v38 = vld [vmem:[%s1375_s0 + $0x60] sm:$0xff]  ;;  %v28_v44 = vld [vmem:[%s1375_s0 + $0x70] sm:$0xff]  ;;  %v29_v49 = vld [vmem:[%s1375_s0 + $0x78] sm:$0xff] }
   0x7   :  { %v220_v23 = vmax.f32 %v156_v13, 0.0  ;;  %v221_v24 = vmax.f32 %v157_v14, 0.0  ;;  %v160_v25 = vadd.f32 %v965_v5, %v89_v15  ;;  %v222_v28 = vmax.f32 %v158_v18, 0.0  ;;  %v30_v54 = vld [vmem:[%s1375_s0 + $0x80] sm:$0xff]  ;;  %v31_v63 = vld [vmem:[%s1375_s0 + $0x88] sm:$0xff]  ;;  %v32_v6 = vld [vmem:[%s1375_s0 + $0x90] sm:$0xff] }
   0x8   :  { %v223_v29 = vmax.f32 %v159_v19, 0.0  ;;  %v225_v36 = vmax.f32 %v161_v26, 0.0  ;;  %v93_v37 = vmul.f32 %v958_v2, %v22_v22  ;;  %v226_v41 = vmax.f32 %v162_v30, 0.0  ;;  %v33_v7 = vld [vmem:[%s1375_s0 + $0x98] sm:$0xff]  ;;  %v34_v12 = vld [vmem:[%s1375_s0 + $0xa0] sm:$0xff]  ;;  %v35_v13 = vld [vmem:[%s1375_s0 + $0xa8] sm:$0xff] }
   0x9   :  { %v741_v34 = vpack.c.bf16 %v221_v24, %v220_v23  ;;  %v224_v35 = vmax.f32 %v160_v25, 0.0  ;;  %v227_v42 = vmax.f32 %v163_v31, 0.0  ;;  %v94_v43 = vmul.f32 %v958_v2, %v23_v27  ;;  %v36_v18 = vld [vmem:[%s1375_s0 + $0xb0] sm:$0xff]  ;;  %v37_v23 = vld [vmem:[%s1375_s0 + $0xb8] sm:$0xff] }
   0xa   :  { %v746_v40 = vpack.c.bf16 %v223_v29, %v222_v28  ;;  %v164_v46 = vadd.f32 %v965_v5, %v93_v37  ;;  %v95_v47 = vmul.f32 %v958_v2, %v24_v32  ;;  %v96_v48 = vmul.f32 %v958_v2, %v25_v33  ;;  %v38_v28 = vld [vmem:[%s1375_s0 + $0xc0] sm:$0xff]  ;;  %v39_v37 = vld [vmem:[%s1375_s0 + $0xc8] sm:$0xff] }
   0xb   :  { %742 = vst [vmem:[%s1378_s3] sm:$0xff] %v741_v34   ;;  %v751_v45 = vpack.c.bf16 %v225_v36, %v224_v35  ;;  %v756_v50 = vpack.c.bf16 %v227_v42, %v226_v41  ;;  %v165_v51 = vadd.f32 %v965_v5, %v94_v43  ;;  %v97_v52 = vmul.f32 %v958_v2, %v26_v38  ;;  %v40_v42 = vld [vmem:[%s1375_s0 + $0xd0] sm:$0xff]  ;;  %v41_v43 = vld [vmem:[%s1375_s0 + $0xd8] sm:$0xff] }
   0xc   :  { %898 = vst [vmem:[%s1378_s3 + $0x8] sm:$0xff] %v746_v40   ;;  %v98_v53 = vmul.f32 %v958_v2, %v27_v39  ;;  %v228_v55 = vmax.f32 %v164_v46, 0.0  ;;  %v166_v56 = vadd.f32 %v965_v5, %v95_v47  ;;  %v167_v57 = vadd.f32 %v965_v5, %v96_v48  ;;  %v42_v48 = vld [vmem:[%s1375_s0 + $0xe0] sm:$0xff] }
   0xd   :  { %899 = vst [vmem:[%s1378_s3 + $0x10] sm:$0xff] %v751_v45   ;;  %v99_v58 = vmul.f32 %v958_v2, %v28_v44  ;;  %900 = vst [vmem:[%s1378_s3 + $0x18] sm:$0xff] %v756_v50   ;;  %v229_v59 = vmax.f32 %v165_v51, 0.0  ;;  %v168_v60 = vadd.f32 %v965_v5, %v97_v52  ;;  %v100_v62 = vmul.f32 %v958_v2, %v29_v49  ;;  %v43_v49 = vld [vmem:[%s1375_s0 + $0xe8] sm:$0xff] }
   0xe   :  { %v169_v61 = vadd.f32 %v965_v5, %v98_v53  ;;  %v230_v0 = vmax.f32 %v166_v56, 0.0  ;;  %v231_v1 = vmax.f32 %v167_v57, 0.0  ;;  %v101_v4 = vmul.f32 %v958_v2, %v30_v54  ;;  %v44_v54 = vld [vmem:[%s1375_s0 + $0xf0] sm:$0xff] }
   0xf   :  { %v170_v3 = vadd.f32 %v965_v5, %v99_v58  ;;  %v761_v8 = vpack.c.bf16 %v229_v59, %v228_v55  ;;  %v232_v9 = vmax.f32 %v168_v60, 0.0  ;;  %v171_v11 = vadd.f32 %v965_v5, %v100_v62  ;;  %v45_v59 = vld [vmem:[%s1375_s0 + $0xf8] sm:$0xff] }
  0x10   :  { %v233_v10 = vmax.f32 %v169_v61, 0.0  ;;  %v766_v14 = vpack.c.bf16 %v231_v1, %v230_v0  ;;  %v102_v16 = vmul.f32 %v958_v2, %v31_v63  ;;  %v172_v17 = vadd.f32 %v965_v5, %v101_v4  ;;  %v46_v0 = vld [vmem:[%s1375_s0 + $0x100] sm:$0xff] }
  0x11   :  { %v234_v15 = vmax.f32 %v170_v3, 0.0  ;;  %901 = vst [vmem:[%s1378_s3 + $0x20] sm:$0xff] %v761_v8   ;;  %v235_v20 = vmax.f32 %v171_v11, 0.0  ;;  %v103_v21 = vmul.f32 %v958_v2, %v32_v6  ;;  %v104_v22 = vmul.f32 %v958_v2, %v33_v7  ;;  %v47_v11 = vld [vmem:[%s1375_s0 + $0x108] sm:$0xff] }
  0x12   :  { %v771_v19 = vpack.c.bf16 %v233_v10, %v232_v9  ;;  %902 = vst [vmem:[%s1378_s3 + $0x28] sm:$0xff] %v766_v14   ;;  %v173_v24 = vadd.f32 %v965_v5, %v102_v16  ;;  %v236_v25 = vmax.f32 %v172_v17, 0.0  ;;  %v105_v26 = vmul.f32 %v958_v2, %v34_v12  ;;  %v48_v16 = vld [vmem:[%s1375_s0 + $0x110] sm:$0xff]  ;;  %v49_v17 = vld [vmem:[%s1375_s0 + $0x118] sm:$0xff] }
  0x13   :  { %v106_v27 = vmul.f32 %v958_v2, %v35_v13  ;;  %v776_v29 = vpack.c.bf16 %v235_v20, %v234_v15  ;;  %v174_v30 = vadd.f32 %v965_v5, %v103_v21  ;;  %v175_v31 = vadd.f32 %v965_v5, %v104_v22  ;;  %v50_v22 = vld [vmem:[%s1375_s0 + $0x120] sm:$0xff] }
  0x14   :  { %903 = vst [vmem:[%s1378_s3 + $0x30] sm:$0xff] %v771_v19   ;;  %v107_v32 = vmul.f32 %v958_v2, %v36_v18  ;;  %v237_v33 = vmax.f32 %v173_v24, 0.0  ;;  %v176_v34 = vadd.f32 %v965_v5, %v105_v26  ;;  %v108_v36 = vmul.f32 %v958_v2, %v37_v23  ;;  %v51_v23 = vld [vmem:[%s1375_s0 + $0x128] sm:$0xff] }
  0x15   :  { %v177_v35 = vadd.f32 %v965_v5, %v106_v27  ;;  %904 = vst [vmem:[%s1378_s3 + $0x38] sm:$0xff] %v776_v29   ;;  %v238_v38 = vmax.f32 %v174_v30, 0.0  ;;  %v239_v39 = vmax.f32 %v175_v31, 0.0  ;;  %v109_v41 = vmul.f32 %v958_v2, %v38_v28  ;;  %v52_v28 = vld [vmem:[%s1375_s0 + $0x130] sm:$0xff] }
  0x16   :  { %v178_v40 = vadd.f32 %v965_v5, %v107_v32  ;;  %v781_v44 = vpack.c.bf16 %v237_v33, %v236_v25  ;;  %v240_v45 = vmax.f32 %v176_v34, 0.0  ;;  %v179_v47 = vadd.f32 %v965_v5, %v108_v36  ;;  %v53_v33 = vld [vmem:[%s1375_s0 + $0x138] sm:$0xff] }
  0x17   :  { %v241_v46 = vmax.f32 %v177_v35, 0.0  ;;  %v786_v50 = vpack.c.bf16 %v239_v39, %v238_v38  ;;  %v110_v52 = vmul.f32 %v958_v2, %v39_v37  ;;  %v180_v53 = vadd.f32 %v965_v5, %v109_v41  ;;  %v54_v38 = vld [vmem:[%s1375_s0 + $0x140] sm:$0xff] }
  0x18   :  { %v242_v51 = vmax.f32 %v178_v40, 0.0  ;;  %905 = vst [vmem:[%s1378_s3 + $0x40] sm:$0xff] %v781_v44   ;;  %v243_v56 = vmax.f32 %v179_v47, 0.0  ;;  %v111_v57 = vmul.f32 %v958_v2, %v40_v42  ;;  %v112_v58 = vmul.f32 %v958_v2, %v41_v43  ;;  %v55_v47 = vld [vmem:[%s1375_s0 + $0x148] sm:$0xff] }
  0x19   :  { %v791_v55 = vpack.c.bf16 %v241_v46, %v240_v45  ;;  %906 = vst [vmem:[%s1378_s3 + $0x48] sm:$0xff] %v786_v50   ;;  %v181_v60 = vadd.f32 %v965_v5, %v110_v52  ;;  %v244_v61 = vmax.f32 %v180_v53, 0.0  ;;  %v113_v62 = vmul.f32 %v958_v2, %v42_v48  ;;  %v56_v52 = vld [vmem:[%s1375_s0 + $0x150] sm:$0xff]  ;;  %v57_v53 = vld [vmem:[%s1375_s0 + $0x158] sm:$0xff] }
  0x1a   :  { %v114_v63 = vmul.f32 %v958_v2, %v43_v49  ;;  %v796_v1 = vpack.c.bf16 %v243_v56, %v242_v51  ;;  %v182_v3 = vadd.f32 %v965_v5, %v111_v57  ;;  %v183_v4 = vadd.f32 %v965_v5, %v112_v58  ;;  %v58_v58 = vld [vmem:[%s1375_s0 + $0x160] sm:$0xff] }
  0x1b   :  { %907 = vst [vmem:[%s1378_s3 + $0x50] sm:$0xff] %v791_v55   ;;  %v115_v6 = vmul.f32 %v958_v2, %v44_v54  ;;  %v245_v7 = vmax.f32 %v181_v60, 0.0  ;;  %v184_v8 = vadd.f32 %v965_v5, %v113_v62  ;;  %v116_v10 = vmul.f32 %v958_v2, %v45_v59  ;;  %v59_v59 = vld [vmem:[%s1375_s0 + $0x168] sm:$0xff] }
  0x1c   :  { %v185_v9 = vadd.f32 %v965_v5, %v114_v63  ;;  %908 = vst [vmem:[%s1378_s3 + $0x58] sm:$0xff] %v796_v1   ;;  %v246_v12 = vmax.f32 %v182_v3, 0.0  ;;  %v247_v13 = vmax.f32 %v183_v4, 0.0  ;;  %v117_v15 = vmul.f32 %v958_v2, %v46_v0  ;;  %v60_v0 = vld [vmem:[%s1375_s0 + $0x170] sm:$0xff] }
  0x1d   :  { %v186_v14 = vadd.f32 %v965_v5, %v115_v6  ;;  %v801_v18 = vpack.c.bf16 %v245_v7, %v244_v61  ;;  %v248_v19 = vmax.f32 %v184_v8, 0.0  ;;  %v187_v21 = vadd.f32 %v965_v5, %v116_v10  ;;  %v61_v7 = vld [vmem:[%s1375_s0 + $0x178] sm:$0xff] }
  0x1e   :  { %v249_v20 = vmax.f32 %v185_v9, 0.0  ;;  %v806_v24 = vpack.c.bf16 %v247_v13, %v246_v12  ;;  %v118_v26 = vmul.f32 %v958_v2, %v47_v11  ;;  %v188_v27 = vadd.f32 %v965_v5, %v117_v15  ;;  %v62_v12 = vld [vmem:[%s1375_s0 + $0x180] sm:$0xff] }
  0x1f   :  { %v250_v25 = vmax.f32 %v186_v14, 0.0  ;;  %909 = vst [vmem:[%s1378_s3 + $0x60] sm:$0xff] %v801_v18   ;;  %v251_v30 = vmax.f32 %v187_v21, 0.0  ;;  %v119_v31 = vmul.f32 %v958_v2, %v48_v16  ;;  %v120_v32 = vmul.f32 %v958_v2, %v49_v17  ;;  %v63_v21 = vld [vmem:[%s1375_s0 + $0x188] sm:$0xff] }
  0x20   :  { %v811_v29 = vpack.c.bf16 %v249_v20, %v248_v19  ;;  %910 = vst [vmem:[%s1378_s3 + $0x68] sm:$0xff] %v806_v24   ;;  %v189_v34 = vadd.f32 %v965_v5, %v118_v26  ;;  %v252_v35 = vmax.f32 %v188_v27, 0.0  ;;  %v121_v36 = vmul.f32 %v958_v2, %v50_v22  ;;  %v64_v26 = vld [vmem:[%s1375_s0 + $0x190] sm:$0xff]  ;;  %v65_v27 = vld [vmem:[%s1375_s0 + $0x198] sm:$0xff] }
  0x21   :  { %v122_v37 = vmul.f32 %v958_v2, %v51_v23  ;;  %v816_v39 = vpack.c.bf16 %v251_v30, %v250_v25  ;;  %v190_v40 = vadd.f32 %v965_v5, %v119_v31  ;;  %v191_v41 = vadd.f32 %v965_v5, %v120_v32  ;;  %v66_v32 = vld [vmem:[%s1375_s0 + $0x1a0] sm:$0xff] }
  0x22   :  { %911 = vst [vmem:[%s1378_s3 + $0x70] sm:$0xff] %v811_v29   ;;  %v123_v42 = vmul.f32 %v958_v2, %v52_v28  ;;  %v253_v43 = vmax.f32 %v189_v34, 0.0  ;;  %v192_v44 = vadd.f32 %v965_v5, %v121_v36  ;;  %v124_v46 = vmul.f32 %v958_v2, %v53_v33  ;;  %v67_v33 = vld [vmem:[%s1375_s0 + $0x1a8] sm:$0xff] }
  0x23   :  { %v193_v45 = vadd.f32 %v965_v5, %v122_v37  ;;  %912 = vst [vmem:[%s1378_s3 + $0x78] sm:$0xff] %v816_v39   ;;  %v254_v48 = vmax.f32 %v190_v40, 0.0  ;;  %v255_v49 = vmax.f32 %v191_v41, 0.0  ;;  %v125_v51 = vmul.f32 %v958_v2, %v54_v38  ;;  %v68_v38 = vld [vmem:[%s1375_s0 + $0x1b0] sm:$0xff] }
  0x24   :  { %v194_v50 = vadd.f32 %v965_v5, %v123_v42  ;;  %v821_v54 = vpack.c.bf16 %v253_v43, %v252_v35  ;;  %v256_v55 = vmax.f32 %v192_v44, 0.0  ;;  %v195_v57 = vadd.f32 %v965_v5, %v124_v46  ;;  %v69_v43 = vld [vmem:[%s1375_s0 + $0x1b8] sm:$0xff] }
  0x25   :  { %v257_v56 = vmax.f32 %v193_v45, 0.0  ;;  %v826_v60 = vpack.c.bf16 %v255_v49, %v254_v48  ;;  %v126_v62 = vmul.f32 %v958_v2, %v55_v47  ;;  %v196_v63 = vadd.f32 %v965_v5, %v125_v51  ;;  %v70_v48 = vld [vmem:[%s1375_s0 + $0x1c0] sm:$0xff] }
  0x26   :  { %v258_v61 = vmax.f32 %v194_v50, 0.0  ;;  %913 = vst [vmem:[%s1378_s3 + $0x80] sm:$0xff] %v821_v54   ;;  %v259_v3 = vmax.f32 %v195_v57, 0.0  ;;  %v127_v4 = vmul.f32 %v958_v2, %v56_v52  ;;  %v128_v6 = vmul.f32 %v958_v2, %v57_v53  ;;  %v71_v57 = vld [vmem:[%s1375_s0 + $0x1c8] sm:$0xff] }
  0x27   :  { %v831_v1 = vpack.c.bf16 %v257_v56, %v256_v55  ;;  %914 = vst [vmem:[%s1378_s3 + $0x88] sm:$0xff] %v826_v60   ;;  %v197_v8 = vadd.f32 %v965_v5, %v126_v62  ;;  %v260_v9 = vmax.f32 %v196_v63, 0.0  ;;  %v129_v10 = vmul.f32 %v958_v2, %v58_v58  ;;  %v72_v62 = vld [vmem:[%s1375_s0 + $0x1d0] sm:$0xff]  ;;  %v73_v63 = vld [vmem:[%s1375_s0 + $0x1d8] sm:$0xff] }
  0x28   :  { %v130_v11 = vmul.f32 %v958_v2, %v59_v59  ;;  %v836_v13 = vpack.c.bf16 %v259_v3, %v258_v61  ;;  %v198_v14 = vadd.f32 %v965_v5, %v127_v4  ;;  %v199_v15 = vadd.f32 %v965_v5, %v128_v6  ;;  %v74_v6 = vld [vmem:[%s1375_s0 + $0x1e0] sm:$0xff] }
  0x29   :  { %915 = vst [vmem:[%s1378_s3 + $0x90] sm:$0xff] %v831_v1   ;;  %v131_v16 = vmul.f32 %v958_v2, %v60_v0  ;;  %v261_v17 = vmax.f32 %v197_v8, 0.0  ;;  %v200_v18 = vadd.f32 %v965_v5, %v129_v10  ;;  %v132_v20 = vmul.f32 %v958_v2, %v61_v7  ;;  %v75_v7 = vld [vmem:[%s1375_s0 + $0x1e8] sm:$0xff] }
  0x2a   :  { %v201_v19 = vadd.f32 %v965_v5, %v130_v11  ;;  %916 = vst [vmem:[%s1378_s3 + $0x98] sm:$0xff] %v836_v13   ;;  %v262_v22 = vmax.f32 %v198_v14, 0.0  ;;  %v263_v23 = vmax.f32 %v199_v15, 0.0  ;;  %v133_v25 = vmul.f32 %v958_v2, %v62_v12  ;;  %v76_v12 = vld [vmem:[%s1375_s0 + $0x1f0] sm:$0xff] }
  0x2b   :  { %v202_v24 = vadd.f32 %v965_v5, %v131_v16  ;;  %v841_v28 = vpack.c.bf16 %v261_v17, %v260_v9  ;;  %v264_v29 = vmax.f32 %v200_v18, 0.0  ;;  %v203_v31 = vadd.f32 %v965_v5, %v132_v20  ;;  %v77_v17 = vld [vmem:[%s1375_s0 + $0x1f8] sm:$0xff] }
  0x2c   :  { %v265_v30 = vmax.f32 %v201_v19, 0.0  ;;  %v846_v34 = vpack.c.bf16 %v263_v23, %v262_v22  ;;  %v134_v36 = vmul.f32 %v958_v2, %v63_v21  ;;  %v204_v37 = vadd.f32 %v965_v5, %v133_v25 }
  0x2d   :  { %v266_v35 = vmax.f32 %v202_v24, 0.0  ;;  %917 = vst [vmem:[%s1378_s3 + $0xa0] sm:$0xff] %v841_v28   ;;  %v267_v40 = vmax.f32 %v203_v31, 0.0  ;;  %v135_v41 = vmul.f32 %v958_v2, %v64_v26  ;;  %v136_v42 = vmul.f32 %v958_v2, %v65_v27 }
  0x2e   :  { %v851_v39 = vpack.c.bf16 %v265_v30, %v264_v29  ;;  %918 = vst [vmem:[%s1378_s3 + $0xa8] sm:$0xff] %v846_v34   ;;  %v205_v44 = vadd.f32 %v965_v5, %v134_v36  ;;  %v268_v45 = vmax.f32 %v204_v37, 0.0  ;;  %v137_v46 = vmul.f32 %v958_v2, %v66_v32 }
  0x2f   :  { %v138_v47 = vmul.f32 %v958_v2, %v67_v33  ;;  %v856_v49 = vpack.c.bf16 %v267_v40, %v266_v35  ;;  %v206_v50 = vadd.f32 %v965_v5, %v135_v41  ;;  %v207_v51 = vadd.f32 %v965_v5, %v136_v42 }
  0x30   :  { %919 = vst [vmem:[%s1378_s3 + $0xb0] sm:$0xff] %v851_v39   ;;  %v139_v52 = vmul.f32 %v958_v2, %v68_v38  ;;  %v269_v53 = vmax.f32 %v205_v44, 0.0  ;;  %v208_v54 = vadd.f32 %v965_v5, %v137_v46  ;;  %v140_v56 = vmul.f32 %v958_v2, %v69_v43 }
  0x31   :  { %v209_v55 = vadd.f32 %v965_v5, %v138_v47  ;;  %920 = vst [vmem:[%s1378_s3 + $0xb8] sm:$0xff] %v856_v49   ;;  %v270_v58 = vmax.f32 %v206_v50, 0.0  ;;  %v271_v59 = vmax.f32 %v207_v51, 0.0  ;;  %v141_v61 = vmul.f32 %v958_v2, %v70_v48 }
  0x32   :  { %v210_v60 = vadd.f32 %v965_v5, %v139_v52  ;;  %v861_v0 = vpack.c.bf16 %v269_v53, %v268_v45  ;;  %v272_v1 = vmax.f32 %v208_v54, 0.0  ;;  %v211_v4 = vadd.f32 %v965_v5, %v140_v56 }
  0x33   :  { %v273_v3 = vmax.f32 %v209_v55, 0.0  ;;  %v866_v8 = vpack.c.bf16 %v271_v59, %v270_v58  ;;  %v142_v10 = vmul.f32 %v958_v2, %v71_v57  ;;  %v212_v11 = vadd.f32 %v965_v5, %v141_v61 }
  0x34   :  { %v274_v9 = vmax.f32 %v210_v60, 0.0  ;;  %921 = vst [vmem:[%s1378_s3 + $0xc0] sm:$0xff] %v861_v0   ;;  %v275_v14 = vmax.f32 %v211_v4, 0.0  ;;  %v143_v15 = vmul.f32 %v958_v2, %v72_v62  ;;  %v144_v16 = vmul.f32 %v958_v2, %v73_v63 }
  0x35   :  { %v871_v13 = vpack.c.bf16 %v273_v3, %v272_v1  ;;  %922 = vst [vmem:[%s1378_s3 + $0xc8] sm:$0xff] %v866_v8   ;;  %v213_v18 = vadd.f32 %v965_v5, %v142_v10  ;;  %v276_v19 = vmax.f32 %v212_v11, 0.0  ;;  %v145_v20 = vmul.f32 %v958_v2, %v74_v6 }
  0x36   :  { %v146_v21 = vmul.f32 %v958_v2, %v75_v7  ;;  %v876_v22 = vpack.c.bf16 %v275_v14, %v274_v9  ;;  %v214_v23 = vadd.f32 %v965_v5, %v143_v15  ;;  %v215_v24 = vadd.f32 %v965_v5, %v144_v16 }
  0x37   :  { %923 = vst [vmem:[%s1378_s3 + $0xd0] sm:$0xff] %v871_v13   ;;  %v147_v25 = vmul.f32 %v958_v2, %v76_v12  ;;  %v277_v26 = vmax.f32 %v213_v18, 0.0  ;;  %v216_v27 = vadd.f32 %v965_v5, %v145_v20  ;;  %v148_v29 = vmul.f32 %v958_v2, %v77_v17 }
  0x38   :  { %v217_v28 = vadd.f32 %v965_v5, %v146_v21  ;;  %924 = vst [vmem:[%s1378_s3 + $0xd8] sm:$0xff] %v876_v22   ;;  %v278_v30 = vmax.f32 %v214_v23, 0.0  ;;  %v279_v31 = vmax.f32 %v215_v24, 0.0 }
  0x39   :  { %v218_v32 = vadd.f32 %v965_v5, %v147_v25  ;;  %v881_v33 = vpack.c.bf16 %v277_v26, %v276_v19  ;;  %v280_v34 = vmax.f32 %v216_v27, 0.0  ;;  %v219_v36 = vadd.f32 %v965_v5, %v148_v29 }
  0x3a   :  { %v281_v35 = vmax.f32 %v217_v28, 0.0  ;;  %v886_v37 = vpack.c.bf16 %v279_v31, %v278_v30 }
  0x3b   :  { %v282_v38 = vmax.f32 %v218_v32, 0.0  ;;  %925 = vst [vmem:[%s1378_s3 + $0xe0] sm:$0xff] %v881_v33   ;;  %v283_v39 = vmax.f32 %v219_v36, 0.0 }
  0x3c   :  { %v891_v2 = vpack.c.bf16 %v281_v35, %v280_v34  ;;  %926 = vst [vmem:[%s1378_s3 + $0xe8] sm:$0xff] %v886_v37  }
  0x3d   :  { %v896_v40 = vpack.c.bf16 %v283_v39, %v282_v38 }
  0x3e   :  { %927 = vst [vmem:[%s1378_s3 + $0xf0] sm:$0xff] %v891_v2  }
  0x3f   :  { %928 = vst [vmem:[%s1378_s3 + $0xf8] sm:$0xff] %v896_v40  }

// kernel: basic_block_forward.4
= control target key start
LH: loop header
LB: loop body
LE: loop exit
PB: predicated region body
PF: predicated region fallthrough
CT: control target
= control target key end

     0   :  { %s1919_s1 = inlined_call_operand.vmem [shape: bf16[128,128], index: 1, kind: input, shape index: {}]   ;;  %s1920_s0 = inlined_call_operand.vmem [shape: bf16[512,128], index: 0, kind: input, shape index: {}]   ;;  %s1921_s2 = inlined_call_operand.vmem [shape: f32[512,128], index: 2, kind: output, shape index: {0}]   ;;  %s1922_s3 = inlined_call_operand.vmem [shape: f32[1,8,128], index: 3, kind: output, shape index: {1}]   ;;  %s1923_s4 = inlined_call_operand.vmem [shape: f32[1,8,128], index: 4, kind: output, shape index: {2}]  }
   0x1   :  { %v1344_v0 = vld [vmem:[%s1919_s1] sm:$0xff]   ;;  %v1345_v1 = vld [vmem:[%s1919_s1 + $0x8] sm:$0xff]   ;;  %v1346_v2 = vld [vmem:[%s1919_s1 + $0x10] sm:$0xff]  }
   0x2   :  { %1247 = vmatprep.subr.bf16.mxu0 %v1344_v0  ;;  %1327 = vmatprep.subr.bf16.mxu1 %v1344_v0  ;;  %v1347_v3 = vld [vmem:[%s1919_s1 + $0x18] sm:$0xff]   ;;  %v1352_v4 = vld [vmem:[%s1920_s0] sm:$0xff]   ;;  %v1349_v6 = vld [vmem:[%s1919_s1 + $0x28] sm:$0xff]  }
   0x3   :  { %1248 = vmatpush3.bf16.msra.mxu0 %v1344_v0  ;;  %1335 = vmatpush3.bf16.msra.mxu1 %v1344_v0  ;;  %v1348_v5 = vld [vmem:[%s1919_s1 + $0x20] sm:$0xff]   ;;  %v1350_v7 = vld [vmem:[%s1919_s1 + $0x30] sm:$0xff]   ;;  %v1351_v8 = vld [vmem:[%s1919_s1 + $0x38] sm:$0xff]  }
   0x4   :  { %1249 = vmatprep.subr.bf16.mxu0 %v1345_v1  ;;  %1328 = vmatprep.subr.bf16.mxu1 %v1345_v1  ;;  %v1368_v9 = vld [vmem:[%s1920_s0 + $0x80] sm:$0xff]   ;;  %v1353_v10 = vld [vmem:[%s1920_s0 + $0x8] sm:$0xff]   ;;  %v1354_v11 = vld [vmem:[%s1920_s0 + $0x10] sm:$0xff]  }
   0x5   :  { %1263 = vmatprep.mubr.bf16.mxu0 %v1352_v4  ;;  %1295 = vmatprep.mubr.bf16.mxu1 %v1368_v9  ;;  %v1369_v12 = vld [vmem:[%s1920_s0 + $0x88] sm:$0xff]   ;;  %v1370_v13 = vld [vmem:[%s1920_s0 + $0x90] sm:$0xff]   ;;  %v1355_v14 = vld [vmem:[%s1920_s0 + $0x18] sm:$0xff]  }
   0x6   :  { %v1356_v15 = vld [vmem:[%s1920_s0 + $0x20] sm:$0xff]   ;;  %v1371_v16 = vld [vmem:[%s1920_s0 + $0x98] sm:$0xff]   ;;  %v1357_v18 = vld [vmem:[%s1920_s0 + $0x28] sm:$0xff]  }
   0x7   :  { %1250 = vmatpush3.bf16.msra.mxu0 %v1345_v1  ;;  %1336 = vmatpush3.bf16.msra.mxu1 %v1345_v1  ;;  %v1372_v17 = vld [vmem:[%s1920_s0 + $0xa0] sm:$0xff]   ;;  %v1373_v19 = vld [vmem:[%s1920_s0 + $0xa8] sm:$0xff]   ;;  %v1358_v20 = vld [vmem:[%s1920_s0 + $0x30] sm:$0xff]  }
   0x8   :  { %1251 = vmatprep.subr.bf16.mxu0 %v1346_v2  ;;  %1329 = vmatprep.subr.bf16.mxu1 %v1346_v2  ;;  %v1374_v21 = vld [vmem:[%s1920_s0 + $0xb0] sm:$0xff]   ;;  %v1359_v22 = vld [vmem:[%s1920_s0 + $0x38] sm:$0xff]   ;;  %v1360_v24 = vld [vmem:[%s1920_s0 + $0x40] sm:$0xff]  }
   0x9   :  { %v1375_v23 = vld [vmem:[%s1920_s0 + $0xb8] sm:$0xff]   ;;  %v1376_v25 = vld [vmem:[%s1920_s0 + $0xc0] sm:$0xff]   ;;  %v1361_v26 = vld [vmem:[%s1920_s0 + $0x48] sm:$0xff]  }
   0xa   :  { %v1377_v27 = vld [vmem:[%s1920_s0 + $0xc8] sm:$0xff]   ;;  %v1362_v28 = vld [vmem:[%s1920_s0 + $0x50] sm:$0xff]   ;;  %v1363_v30 = vld [vmem:[%s1920_s0 + $0x58] sm:$0xff]  }
   0xb   :  { %1252 = vmatpush3.bf16.msra.mxu0 %v1346_v2  ;;  %1337 = vmatpush3.bf16.msra.mxu1 %v1346_v2  ;;  %v1378_v29 = vld [vmem:[%s1920_s0 + $0xd0] sm:$0xff]   ;;  %v1379_v31 = vld [vmem:[%s1920_s0 + $0xd8] sm:$0xff]   ;;  %v1364_v32 = vld [vmem:[%s1920_s0 + $0x60] sm:$0xff]  }
   0xc   :  { %1253 = vmatprep.subr.bf16.mxu0 %v1347_v3  ;;  %1330 = vmatprep.subr.bf16.mxu1 %v1347_v3  ;;  %v1380_v33 = vld [vmem:[%s1920_s0 + $0xe0] sm:$0xff]   ;;  %v1365_v34 = vld [vmem:[%s1920_s0 + $0x68] sm:$0xff]   ;;  %v1366_v36 = vld [vmem:[%s1920_s0 + $0x70] sm:$0xff]  }
   0xd   :  { %v1381_v35 = vld [vmem:[%s1920_s0 + $0xe8] sm:$0xff]   ;;  %v1382_v37 = vld [vmem:[%s1920_s0 + $0xf0] sm:$0xff]   ;;  %v1367_v38 = vld [vmem:[%s1920_s0 + $0x78] sm:$0xff]  }
   0xe   :  { %v1383_v39 = vld [vmem:[%s1920_s0 + $0xf8] sm:$0xff]  }
   0xf   :  { %1254 = vmatpush3.bf16.msra.mxu0 %v1347_v3  ;;  %1338 = vmatpush3.bf16.msra.mxu1 %v1347_v3 }
  0x10   :  { %1255 = vmatprep.subr.bf16.mxu0 %v1348_v5  ;;  %1331 = vmatprep.subr.bf16.mxu1 %v1348_v5 }
  0x13   :  { %1256 = vmatpush3.bf16.msra.mxu0 %v1348_v5  ;;  %1339 = vmatpush3.bf16.msra.mxu1 %v1348_v5 }
  0x14   :  { %1257 = vmatprep.subr.bf16.mxu0 %v1349_v6  ;;  %1332 = vmatprep.subr.bf16.mxu1 %v1349_v6 }
  0x17   :  { %1258 = vmatpush3.bf16.msra.mxu0 %v1349_v6  ;;  %1340 = vmatpush3.bf16.msra.mxu1 %v1349_v6 }
  0x18   :  { %1259 = vmatprep.subr.bf16.mxu0 %v1350_v7  ;;  %1333 = vmatprep.subr.bf16.mxu1 %v1350_v7 }
  0x1b   :  { %1260 = vmatpush3.bf16.msra.mxu0 %v1350_v7  ;;  %1341 = vmatpush3.bf16.msra.mxu1 %v1350_v7 }
  0x1c   :  { %1261 = vmatprep.subr.bf16.mxu0 %v1351_v8  ;;  %1334 = vmatprep.subr.bf16.mxu1 %v1351_v8 }
  0x1f   :  { %1262 = vmatpush3.bf16.msra.mxu0 %v1351_v8  ;;  %1342 = vmatpush3.bf16.msra.mxu1 %v1351_v8 }
  0x22   :  { %1264 = vmatmul.mubr.bf16.vlgmr.msra.gmra.mrb[0].mxu0 %v1353_v10  ;;  %1296 = vmatmul.mubr.bf16.vlgmr.msra.gmra.mrb[0].mxu1 %v1369_v12 }
  0x23   :  { %1267 = vmatprep.mubr.bf16.mxu0 %v1354_v11  ;;  %1299 = vmatprep.mubr.bf16.mxu1 %v1370_v13 }
  0x2a   :  { %1268 = vmatmul.mubr.bf16.gmra.mrb[4].mxu0 %v1355_v14  ;;  %1300 = vmatmul.mubr.bf16.gmra.mrb[4].mxu1 %v1371_v16 }
  0x2b   :  { %1271 = vmatprep.mubr.bf16.mxu0 %v1356_v15  ;;  %1303 = vmatprep.mubr.bf16.mxu1 %v1372_v17 }
  0x32   :  { %1272 = vmatmul.mubr.bf16.gmra.mrb[8].mxu0 %v1357_v18  ;;  %1304 = vmatmul.mubr.bf16.gmra.mrb[8].mxu1 %v1373_v19 }
  0x33   :  { %1275 = vmatprep.mubr.bf16.mxu0 %v1358_v20  ;;  %1307 = vmatprep.mubr.bf16.mxu1 %v1374_v21 }
  0x3a   :  { %1276 = vmatmul.mubr.bf16.gmra.mrb[12].mxu0 %v1359_v22  ;;  %1308 = vmatmul.mubr.bf16.gmra.mrb[12].mxu1 %v1375_v23 }
  0x3b   :  { %1279 = vmatprep.mubr.bf16.mxu0 %v1360_v24  ;;  %1311 = vmatprep.mubr.bf16.mxu1 %v1376_v25 }
  0x42   :  { %1280 = vmatmul.mubr.bf16.gmra.mrb[16].mxu0 %v1361_v26  ;;  %1312 = vmatmul.mubr.bf16.gmra.mrb[16].mxu1 %v1377_v27 }
  0x43   :  { %1283 = vmatprep.mubr.bf16.mxu0 %v1362_v28  ;;  %1315 = vmatprep.mubr.bf16.mxu1 %v1378_v29 }
  0x4a   :  { %1284 = vmatmul.mubr.bf16.gmra.mrb[20].mxu0 %v1363_v30  ;;  %1316 = vmatmul.mubr.bf16.gmra.mrb[20].mxu1 %v1379_v31 }
  0x4b   :  { %1287 = vmatprep.mubr.bf16.mxu0 %v1364_v32  ;;  %1319 = vmatprep.mubr.bf16.mxu1 %v1380_v33 }
  0x52   :  { %1288 = vmatmul.mubr.bf16.gmra.mrb[24].mxu0 %v1365_v34  ;;  %1320 = vmatmul.mubr.bf16.gmra.mrb[24].mxu1 %v1381_v35 }
  0x53   :  { %1291 = vmatprep.mubr.bf16.mxu0 %v1366_v36  ;;  %1323 = vmatprep.mubr.bf16.mxu1 %v1382_v37 }
  0x5a   :  { %1292 = vmatmul.mubr.bf16.gmra.mrb[28].mxu0 %v1367_v38  ;;  %1324 = vmatmul.mubr.bf16.gmra.mrb[28].mxu1 %v1383_v39 }
  0xf5   :  { %v1265_v40 = vpop.f32.mrb[0].mxu0  ;;  %v1529_v41 = vpop.f32.mrb[0].mxu1 }
  0xf6   :  { %v501_v42 = vpop.f32.mrb[1].mxu0  ;;  %v1531_v43 = vpop.f32.mrb[1].mxu1  ;;  %822 = vst [vmem:[%s1921_s2 + $0x10] sm:$0xff] %v1265_v40  ;;  %854 = vst [vmem:[%s1921_s2 + $0x110] sm:$0xff] %v1529_v41  ;;  %v1022_v51 = vmul.f32 %v1265_v40, %v1265_v40 }
  0xf7   :  { %v1266_v44 = vpop.f32.mrb[2].mxu0  ;;  %v1533_v45 = vpop.f32.mrb[2].mxu1  ;;  %820 = vst [vmem:[%s1921_s2] sm:$0xff] %v501_v42  ;;  %852 = vst [vmem:[%s1921_s2 + $0x100] sm:$0xff] %v1531_v43  ;;  %v1020_v48 = vmul.f32 %v501_v42, %v501_v42 }
  0xf8   :  { %v504_v46 = vpop.f32.mrb[3].mxu0  ;;  %v1542_v47 = vpop.f32.mrb[3].mxu1  ;;  %823 = vst [vmem:[%s1921_s2 + $0x18] sm:$0xff] %v1266_v44  ;;  %855 = vst [vmem:[%s1921_s2 + $0x118] sm:$0xff] %v1533_v45  ;;  %v1023_v56 = vmul.f32 %v1266_v44, %v1266_v44 }
  0xf9   :  { %821 = vst [vmem:[%s1921_s2 + $0x8] sm:$0xff] %v504_v46  ;;  %v951_v49 = vadd.f32 %v504_v46, %v501_v42  ;;  %v1021_v50 = vmul.f32 %v504_v46, %v504_v46  ;;  %853 = vst [vmem:[%s1921_s2 + $0x108] sm:$0xff] %v1542_v47 }
  0xfb   :  { %v952_v52 = vadd.f32 %v1265_v40, %v951_v49  ;;  %v1084_v53 = vadd.f32 %v1021_v50, %v1020_v48 }
  0xfd   :  { %v1269_v54 = vpop.f32.mrb[4].mxu0  ;;  %v1565_v55 = vpop.f32.mrb[4].mxu1  ;;  %v953_v59 = vadd.f32 %v1266_v44, %v952_v52  ;;  %v1085_v60 = vadd.f32 %v1084_v53, %v1022_v51 }
  0xfe   :  { %v517_v57 = vpop.f32.mrb[5].mxu0  ;;  %v1567_v58 = vpop.f32.mrb[5].mxu1  ;;  %826 = vst [vmem:[%s1921_s2 + $0x30] sm:$0xff] %v1269_v54  ;;  %858 = vst [vmem:[%s1921_s2 + $0x130] sm:$0xff] %v1565_v55  ;;  %v1026_v7 = vmul.f32 %v1269_v54, %v1269_v54 }
  0xff   :  { %v1270_v61 = vpop.f32.mrb[6].mxu0  ;;  %v1569_v62 = vpop.f32.mrb[6].mxu1  ;;  %v1086_v1 = vadd.f32 %v1085_v60, %v1023_v56  ;;  %824 = vst [vmem:[%s1921_s2 + $0x20] sm:$0xff] %v517_v57  ;;  %v954_v2 = vadd.f32 %v953_v59, %v517_v57  ;;  %v1024_v3 = vmul.f32 %v517_v57, %v517_v57  ;;  %856 = vst [vmem:[%s1921_s2 + $0x120] sm:$0xff] %v1567_v58 }
 0x100   :  { %v520_v63 = vpop.f32.mrb[7].mxu0  ;;  %v1578_v0 = vpop.f32.mrb[7].mxu1  ;;  %827 = vst [vmem:[%s1921_s2 + $0x38] sm:$0xff] %v1270_v61  ;;  %859 = vst [vmem:[%s1921_s2 + $0x138] sm:$0xff] %v1569_v62  ;;  %v1027_v12 = vmul.f32 %v1270_v61, %v1270_v61 }
 0x101   :  { %v1087_v4 = vadd.f32 %v1086_v1, %v1024_v3  ;;  %825 = vst [vmem:[%s1921_s2 + $0x28] sm:$0xff] %v520_v63  ;;  %v955_v5 = vadd.f32 %v954_v2, %v520_v63  ;;  %v1025_v6 = vmul.f32 %v520_v63, %v520_v63  ;;  %857 = vst [vmem:[%s1921_s2 + $0x128] sm:$0xff] %v1578_v0 }
 0x103   :  { %v956_v8 = vadd.f32 %v1269_v54, %v955_v5  ;;  %v1088_v9 = vadd.f32 %v1087_v4, %v1025_v6 }
 0x105   :  { %v1273_v10 = vpop.f32.mrb[8].mxu0  ;;  %v1601_v11 = vpop.f32.mrb[8].mxu1  ;;  %v1089_v15 = vadd.f32 %v1088_v9, %v1026_v7  ;;  %v957_v16 = vadd.f32 %v1270_v61, %v956_v8 }
 0x106   :  { %v533_v13 = vpop.f32.mrb[9].mxu0  ;;  %v1603_v14 = vpop.f32.mrb[9].mxu1  ;;  %830 = vst [vmem:[%s1921_s2 + $0x50] sm:$0xff] %v1273_v10  ;;  %862 = vst [vmem:[%s1921_s2 + $0x150] sm:$0xff] %v1601_v11  ;;  %v1030_v27 = vmul.f32 %v1273_v10, %v1273_v10 }
 0x107   :  { %v1274_v17 = vpop.f32.mrb[10].mxu0  ;;  %v1605_v18 = vpop.f32.mrb[10].mxu1  ;;  %828 = vst [vmem:[%s1921_s2 + $0x40] sm:$0xff] %v533_v13  ;;  %v958_v21 = vadd.f32 %v957_v16, %v533_v13  ;;  %v1028_v22 = vmul.f32 %v533_v13, %v533_v13  ;;  %v1090_v23 = vadd.f32 %v1089_v15, %v1027_v12  ;;  %860 = vst [vmem:[%s1921_s2 + $0x140] sm:$0xff] %v1603_v14 }
 0x108   :  { %v536_v19 = vpop.f32.mrb[11].mxu0  ;;  %v1614_v20 = vpop.f32.mrb[11].mxu1  ;;  %831 = vst [vmem:[%s1921_s2 + $0x58] sm:$0xff] %v1274_v17  ;;  %863 = vst [vmem:[%s1921_s2 + $0x158] sm:$0xff] %v1605_v18  ;;  %v1031_v32 = vmul.f32 %v1274_v17, %v1274_v17 }
 0x109   :  { %v1091_v24 = vadd.f32 %v1090_v23, %v1028_v22  ;;  %829 = vst [vmem:[%s1921_s2 + $0x48] sm:$0xff] %v536_v19  ;;  %v959_v25 = vadd.f32 %v958_v21, %v536_v19  ;;  %v1029_v26 = vmul.f32 %v536_v19, %v536_v19  ;;  %861 = vst [vmem:[%s1921_s2 + $0x148] sm:$0xff] %v1614_v20 }
 0x10b   :  { %v960_v28 = vadd.f32 %v1273_v10, %v959_v25  ;;  %v1092_v29 = vadd.f32 %v1091_v24, %v1029_v26 }
 0x10d   :  { %v1277_v30 = vpop.f32.mrb[12].mxu0  ;;  %v1637_v31 = vpop.f32.mrb[12].mxu1  ;;  %v1093_v35 = vadd.f32 %v1092_v29, %v1030_v27  ;;  %v961_v36 = vadd.f32 %v1274_v17, %v960_v28 }
 0x10e   :  { %v549_v33 = vpop.f32.mrb[13].mxu0  ;;  %v1639_v34 = vpop.f32.mrb[13].mxu1  ;;  %834 = vst [vmem:[%s1921_s2 + $0x70] sm:$0xff] %v1277_v30  ;;  %866 = vst [vmem:[%s1921_s2 + $0x170] sm:$0xff] %v1637_v31  ;;  %v1034_v51 = vmul.f32 %v1277_v30, %v1277_v30 }
 0x10f   :  { %v1278_v37 = vpop.f32.mrb[14].mxu0  ;;  %v1641_v38 = vpop.f32.mrb[14].mxu1  ;;  %832 = vst [vmem:[%s1921_s2 + $0x60] sm:$0xff] %v549_v33  ;;  %v962_v42 = vadd.f32 %v961_v36, %v549_v33  ;;  %v1032_v44 = vmul.f32 %v549_v33, %v549_v33  ;;  %v1094_v46 = vadd.f32 %v1093_v35, %v1031_v32  ;;  %864 = vst [vmem:[%s1921_s2 + $0x160] sm:$0xff] %v1639_v34 }
 0x110   :  { %v552_v39 = vpop.f32.mrb[15].mxu0  ;;  %v1650_v40 = vpop.f32.mrb[15].mxu1  ;;  %835 = vst [vmem:[%s1921_s2 + $0x78] sm:$0xff] %v1278_v37  ;;  %867 = vst [vmem:[%s1921_s2 + $0x178] sm:$0xff] %v1641_v38  ;;  %v1035_v57 = vmul.f32 %v1278_v37, %v1278_v37 }
 0x111   :  { %v1095_v48 = vadd.f32 %v1094_v46, %v1032_v44  ;;  %833 = vst [vmem:[%s1921_s2 + $0x68] sm:$0xff] %v552_v39  ;;  %v963_v49 = vadd.f32 %v962_v42, %v552_v39  ;;  %v1033_v50 = vmul.f32 %v552_v39, %v552_v39  ;;  %865 = vst [vmem:[%s1921_s2 + $0x168] sm:$0xff] %v1650_v40 }
 0x113   :  { %v964_v52 = vadd.f32 %v1277_v30, %v963_v49  ;;  %v1096_v53 = vadd.f32 %v1095_v48, %v1033_v50 }
 0x115   :  { %v1281_v54 = vpop.f32.mrb[16].mxu0  ;;  %v1673_v56 = vpop.f32.mrb[16].mxu1  ;;  %v1097_v61 = vadd.f32 %v1096_v53, %v1034_v51  ;;  %v965_v63 = vadd.f32 %v1278_v37, %v964_v52 }
 0x116   :  { %v565_v59 = vpop.f32.mrb[17].mxu0  ;;  %v1675_v60 = vpop.f32.mrb[17].mxu1  ;;  %838 = vst [vmem:[%s1921_s2 + $0x90] sm:$0xff] %v1281_v54  ;;  %870 = vst [vmem:[%s1921_s2 + $0x190] sm:$0xff] %v1673_v56  ;;  %v1038_v12 = vmul.f32 %v1281_v54, %v1281_v54 }
 0x117   :  { %v1282_v1 = vpop.f32.mrb[18].mxu0  ;;  %v1677_v2 = vpop.f32.mrb[18].mxu1  ;;  %836 = vst [vmem:[%s1921_s2 + $0x80] sm:$0xff] %v565_v59  ;;  %v966_v5 = vadd.f32 %v965_v63, %v565_v59  ;;  %v1036_v6 = vmul.f32 %v565_v59, %v565_v59  ;;  %v1098_v7 = vadd.f32 %v1097_v61, %v1035_v57  ;;  %868 = vst [vmem:[%s1921_s2 + $0x180] sm:$0xff] %v1675_v60 }
 0x118   :  { %v568_v3 = vpop.f32.mrb[19].mxu0  ;;  %v1686_v4 = vpop.f32.mrb[19].mxu1  ;;  %839 = vst [vmem:[%s1921_s2 + $0x98] sm:$0xff] %v1282_v1  ;;  %871 = vst [vmem:[%s1921_s2 + $0x198] sm:$0xff] %v1677_v2  ;;  %v1039_v19 = vmul.f32 %v1282_v1, %v1282_v1 }
 0x119   :  { %v1099_v8 = vadd.f32 %v1098_v7, %v1036_v6  ;;  %837 = vst [vmem:[%s1921_s2 + $0x88] sm:$0xff] %v568_v3  ;;  %v967_v9 = vadd.f32 %v966_v5, %v568_v3  ;;  %v1037_v10 = vmul.f32 %v568_v3, %v568_v3  ;;  %869 = vst [vmem:[%s1921_s2 + $0x188] sm:$0xff] %v1686_v4 }
 0x11b   :  { %v968_v13 = vadd.f32 %v1281_v54, %v967_v9  ;;  %v1100_v15 = vadd.f32 %v1099_v8, %v1037_v10 }
 0x11d   :  { %v1285_v16 = vpop.f32.mrb[20].mxu0  ;;  %v1709_v17 = vpop.f32.mrb[20].mxu1  ;;  %v1101_v23 = vadd.f32 %v1100_v15, %v1038_v12  ;;  %v969_v24 = vadd.f32 %v1282_v1, %v968_v13 }
 0x11e   :  { %v581_v21 = vpop.f32.mrb[21].mxu0  ;;  %v1711_v22 = vpop.f32.mrb[21].mxu1  ;;  %842 = vst [vmem:[%s1921_s2 + $0xb0] sm:$0xff] %v1285_v16  ;;  %874 = vst [vmem:[%s1921_s2 + $0x1b0] sm:$0xff] %v1709_v17  ;;  %v1042_v37 = vmul.f32 %v1285_v16, %v1285_v16 }
 0x11f   :  { %v1286_v25 = vpop.f32.mrb[22].mxu0  ;;  %v1713_v26 = vpop.f32.mrb[22].mxu1  ;;  %840 = vst [vmem:[%s1921_s2 + $0xa0] sm:$0xff] %v581_v21  ;;  %v970_v29 = vadd.f32 %v969_v24, %v581_v21  ;;  %v1040_v30 = vmul.f32 %v581_v21, %v581_v21  ;;  %v1102_v32 = vadd.f32 %v1101_v23, %v1039_v19  ;;  %872 = vst [vmem:[%s1921_s2 + $0x1a0] sm:$0xff] %v1711_v22 }
 0x120   :  { %v584_v27 = vpop.f32.mrb[23].mxu0  ;;  %v1722_v28 = vpop.f32.mrb[23].mxu1  ;;  %843 = vst [vmem:[%s1921_s2 + $0xb8] sm:$0xff] %v1286_v25  ;;  %875 = vst [vmem:[%s1921_s2 + $0x1b8] sm:$0xff] %v1713_v26  ;;  %v1043_v48 = vmul.f32 %v1286_v25, %v1286_v25 }
 0x121   :  { %v1103_v33 = vadd.f32 %v1102_v32, %v1040_v30  ;;  %841 = vst [vmem:[%s1921_s2 + $0xa8] sm:$0xff] %v584_v27  ;;  %v971_v35 = vadd.f32 %v970_v29, %v584_v27  ;;  %v1041_v36 = vmul.f32 %v584_v27, %v584_v27  ;;  %873 = vst [vmem:[%s1921_s2 + $0x1a8] sm:$0xff] %v1722_v28 }
 0x123   :  { %v972_v39 = vadd.f32 %v1285_v16, %v971_v35  ;;  %v1104_v42 = vadd.f32 %v1103_v33, %v1041_v36 }
 0x125   :  { %v1289_v44 = vpop.f32.mrb[24].mxu0  ;;  %v1745_v46 = vpop.f32.mrb[24].mxu1  ;;  %v1105_v51 = vadd.f32 %v1104_v42, %v1042_v37  ;;  %v973_v52 = vadd.f32 %v1286_v25, %v972_v39 }
 0x126   :  { %v597_v49 = vpop.f32.mrb[25].mxu0  ;;  %v1747_v50 = vpop.f32.mrb[25].mxu1  ;;  %846 = vst [vmem:[%s1921_s2 + $0xd0] sm:$0xff] %v1289_v44  ;;  %878 = vst [vmem:[%s1921_s2 + $0x1d0] sm:$0xff] %v1745_v46  ;;  %v1046_v7 = vmul.f32 %v1289_v44, %v1289_v44 }
 0x127   :  { %v1290_v53 = vpop.f32.mrb[26].mxu0  ;;  %v1749_v54 = vpop.f32.mrb[26].mxu1  ;;  %844 = vst [vmem:[%s1921_s2 + $0xc0] sm:$0xff] %v597_v49  ;;  %v974_v61 = vadd.f32 %v973_v52, %v597_v49  ;;  %v1044_v63 = vmul.f32 %v597_v49, %v597_v49  ;;  %v1106_v1 = vadd.f32 %v1105_v51, %v1043_v48  ;;  %876 = vst [vmem:[%s1921_s2 + $0x1c0] sm:$0xff] %v1747_v50 }
 0x128   :  { %v600_v57 = vpop.f32.mrb[27].mxu0  ;;  %v1758_v59 = vpop.f32.mrb[27].mxu1  ;;  %847 = vst [vmem:[%s1921_s2 + $0xd8] sm:$0xff] %v1290_v53  ;;  %879 = vst [vmem:[%s1921_s2 + $0x1d8] sm:$0xff] %v1749_v54  ;;  %v1047_v13 = vmul.f32 %v1290_v53, %v1290_v53  ;;  %v1052_v51 = vmul.f32 %v1531_v43, %v1531_v43 }
 0x129   :  { %v1107_v3 = vadd.f32 %v1106_v1, %v1044_v63  ;;  %845 = vst [vmem:[%s1921_s2 + $0xc8] sm:$0xff] %v600_v57  ;;  %v975_v5 = vadd.f32 %v974_v61, %v600_v57  ;;  %v1045_v6 = vmul.f32 %v600_v57, %v600_v57  ;;  %877 = vst [vmem:[%s1921_s2 + $0x1c8] sm:$0xff] %v1758_v59 }
 0x12a   :  { %v1053_v63 = vmul.f32 %v1542_v47, %v1542_v47  ;;  %v1054_v1 = vmul.f32 %v1529_v41, %v1529_v41 }
 0x12b   :  { %v976_v8 = vadd.f32 %v1289_v44, %v975_v5  ;;  %v1108_v9 = vadd.f32 %v1107_v3, %v1045_v6  ;;  %v1055_v6 = vmul.f32 %v1533_v45, %v1533_v45 }
 0x12d   :  { %v1293_v10 = vpop.f32.mrb[28].mxu0  ;;  %v1781_v12 = vpop.f32.mrb[28].mxu1  ;;  %v1109_v19 = vadd.f32 %v1108_v9, %v1046_v7  ;;  %v977_v21 = vadd.f32 %v1290_v53, %v976_v8 }
 0x12e   :  { %v613_v15 = vpop.f32.mrb[29].mxu0  ;;  %v1783_v16 = vpop.f32.mrb[29].mxu1  ;;  %850 = vst [vmem:[%s1921_s2 + $0xf0] sm:$0xff] %v1293_v10  ;;  %882 = vst [vmem:[%s1921_s2 + $0x1f0] sm:$0xff] %v1781_v12  ;;  %v1050_v37 = vmul.f32 %v1293_v10, %v1293_v10 }
 0x12f   :  { %v1294_v23 = vpop.f32.mrb[30].mxu0  ;;  %v1785_v24 = vpop.f32.mrb[30].mxu1  ;;  %848 = vst [vmem:[%s1921_s2 + $0xe0] sm:$0xff] %v613_v15  ;;  %v978_v29 = vadd.f32 %v977_v21, %v613_v15  ;;  %v1048_v30 = vmul.f32 %v613_v15, %v613_v15  ;;  %v1110_v32 = vadd.f32 %v1109_v19, %v1047_v13  ;;  %880 = vst [vmem:[%s1921_s2 + $0x1e0] sm:$0xff] %v1783_v16 }
 0x130   :  { %v616_v25 = vpop.f32.mrb[31].mxu0  ;;  %v1794_v27 = vpop.f32.mrb[31].mxu1  ;;  %851 = vst [vmem:[%s1921_s2 + $0xf8] sm:$0xff] %v1294_v23  ;;  %883 = vst [vmem:[%s1921_s2 + $0x1f8] sm:$0xff] %v1785_v24  ;;  %v1051_v44 = vmul.f32 %v1294_v23, %v1294_v23  ;;  %v1057_v15 = vmul.f32 %v1578_v0, %v1578_v0 }
 0x131   :  { %v1111_v33 = vadd.f32 %v1110_v32, %v1048_v30  ;;  %849 = vst [vmem:[%s1921_s2 + $0xe8] sm:$0xff] %v616_v25  ;;  %v979_v35 = vadd.f32 %v978_v29, %v616_v25  ;;  %v1049_v36 = vmul.f32 %v616_v25, %v616_v25  ;;  %881 = vst [vmem:[%s1921_s2 + $0x1e8] sm:$0xff] %v1794_v27 }
 0x133   :  { %v980_v39 = vadd.f32 %v1293_v10, %v979_v35  ;;  %v1112_v42 = vadd.f32 %v1111_v33, %v1049_v36  ;;  %v1061_v33 = vmul.f32 %v1614_v20, %v1614_v20 }
 0x135   :  { %v1113_v48 = vadd.f32 %v1112_v42, %v1050_v37  ;;  %v981_v49 = vadd.f32 %v1294_v23, %v980_v39 }
 0x137   :  { %v982_v52 = vadd.f32 %v981_v49, %v1531_v43  ;;  %v1114_v53 = vadd.f32 %v1113_v48, %v1051_v44  ;;  %v1056_v43 = vmul.f32 %v1567_v58, %v1567_v58  ;;  %v1065_v49 = vmul.f32 %v1650_v40, %v1650_v40 }
 0x139   :  { %v1115_v57 = vadd.f32 %v1114_v53, %v1052_v51  ;;  %v983_v61 = vadd.f32 %v982_v52, %v1542_v47 }
 0x13b   :  { %v984_v3 = vadd.f32 %v1529_v41, %v983_v61  ;;  %v1116_v5 = vadd.f32 %v1115_v57, %v1053_v63  ;;  %v1058_v41 = vmul.f32 %v1565_v55, %v1565_v55 }
 0x13d   :  { %v1117_v7 = vadd.f32 %v1116_v5, %v1054_v1  ;;  %v985_v8 = vadd.f32 %v1533_v45, %v984_v3  ;;  %v1059_v45 = vmul.f32 %v1569_v62, %v1569_v62  ;;  %v1069_v3 = vmul.f32 %v1686_v4, %v1686_v4 }
 0x13f   :  { %v986_v9 = vadd.f32 %v985_v8, %v1567_v58  ;;  %v1118_v10 = vadd.f32 %v1117_v7, %v1055_v6  ;;  %v1060_v58 = vmul.f32 %v1603_v14, %v1603_v14 }
 0x141   :  { %v1119_v13 = vadd.f32 %v1118_v10, %v1056_v43  ;;  %v987_v47 = vadd.f32 %v986_v9, %v1578_v0 }
 0x143   :  { %v988_v19 = vadd.f32 %v1565_v55, %v987_v47  ;;  %v1120_v21 = vadd.f32 %v1119_v13, %v1057_v15  ;;  %v1062_v55 = vmul.f32 %v1601_v11, %v1601_v11  ;;  %v1073_v13 = vmul.f32 %v1722_v28, %v1722_v28 }
 0x145   :  { %v1121_v23 = vadd.f32 %v1120_v21, %v1058_v41  ;;  %v989_v25 = vadd.f32 %v1569_v62, %v988_v19  ;;  %v1063_v62 = vmul.f32 %v1605_v18, %v1605_v18 }
 0x147   :  { %v990_v29 = vadd.f32 %v989_v25, %v1603_v14  ;;  %v1122_v30 = vadd.f32 %v1121_v23, %v1059_v45  ;;  %v1064_v14 = vmul.f32 %v1639_v34, %v1639_v34  ;;  %v1077_v25 = vmul.f32 %v1758_v59, %v1758_v59 }
 0x149   :  { %v1123_v32 = vadd.f32 %v1122_v30, %v1060_v58  ;;  %v991_v0 = vadd.f32 %v990_v29, %v1614_v20 }
 0x14b   :  { %v992_v35 = vadd.f32 %v1601_v11, %v991_v0  ;;  %v1124_v36 = vadd.f32 %v1123_v32, %v1061_v33  ;;  %v1066_v11 = vmul.f32 %v1637_v31, %v1637_v31 }
 0x14d   :  { %v1125_v37 = vadd.f32 %v1124_v36, %v1062_v55  ;;  %v993_v39 = vadd.f32 %v1605_v18, %v992_v35  ;;  %v1067_v18 = vmul.f32 %v1641_v38, %v1641_v38  ;;  %v1081_v35 = vmul.f32 %v1794_v27, %v1794_v27 }
 0x14f   :  { %v994_v42 = vadd.f32 %v993_v39, %v1639_v34  ;;  %v1126_v44 = vadd.f32 %v1125_v37, %v1063_v62  ;;  %v1068_v34 = vmul.f32 %v1675_v60, %v1675_v60 }
 0x151   :  { %v1127_v48 = vadd.f32 %v1126_v44, %v1064_v14  ;;  %v995_v20 = vadd.f32 %v994_v42, %v1650_v40 }
 0x153   :  { %v996_v51 = vadd.f32 %v1637_v31, %v995_v20  ;;  %v1128_v52 = vadd.f32 %v1127_v48, %v1065_v49  ;;  %v1070_v31 = vmul.f32 %v1673_v56, %v1673_v56 }
 0x155   :  { %v1129_v53 = vadd.f32 %v1128_v52, %v1066_v11  ;;  %v997_v57 = vadd.f32 %v1641_v38, %v996_v51  ;;  %v1071_v38 = vmul.f32 %v1677_v2, %v1677_v2 }
 0x157   :  { %v998_v61 = vadd.f32 %v997_v57, %v1675_v60  ;;  %v1130_v63 = vadd.f32 %v1129_v53, %v1067_v18  ;;  %v1072_v60 = vmul.f32 %v1711_v22, %v1711_v22 }
 0x159   :  { %v1131_v1 = vadd.f32 %v1130_v63, %v1068_v34  ;;  %v999_v40 = vadd.f32 %v998_v61, %v1686_v4 }
 0x15b   :  { %v1000_v5 = vadd.f32 %v1673_v56, %v999_v40  ;;  %v1132_v6 = vadd.f32 %v1131_v1, %v1069_v3  ;;  %v1074_v56 = vmul.f32 %v1709_v17, %v1709_v17 }
 0x15d   :  { %v1133_v7 = vadd.f32 %v1132_v6, %v1070_v31  ;;  %v1001_v8 = vadd.f32 %v1677_v2, %v1000_v5  ;;  %v1075_v2 = vmul.f32 %v1713_v26, %v1713_v26 }
 0x15f   :  { %v1002_v43 = vadd.f32 %v1001_v8, %v1711_v22  ;;  %v1134_v9 = vadd.f32 %v1133_v7, %v1071_v38  ;;  %v1076_v22 = vmul.f32 %v1747_v50, %v1747_v50 }
 0x161   :  { %v1135_v10 = vadd.f32 %v1134_v9, %v1072_v60  ;;  %v1003_v4 = vadd.f32 %v1002_v43, %v1722_v28 }
 0x163   :  { %v1004_v47 = vadd.f32 %v1709_v17, %v1003_v4  ;;  %v1136_v15 = vadd.f32 %v1135_v10, %v1073_v13  ;;  %v1078_v17 = vmul.f32 %v1745_v46, %v1745_v46 }
 0x165   :  { %v1137_v41 = vadd.f32 %v1136_v15, %v1074_v56  ;;  %v1005_v19 = vadd.f32 %v1713_v26, %v1004_v47  ;;  %v1079_v26 = vmul.f32 %v1749_v54, %v1749_v54 }
 0x167   :  { %v1006_v21 = vadd.f32 %v1005_v19, %v1747_v50  ;;  %v1138_v45 = vadd.f32 %v1137_v41, %v1075_v2  ;;  %v1080_v50 = vmul.f32 %v1783_v16, %v1783_v16 }
 0x169   :  { %v1139_v23 = vadd.f32 %v1138_v45, %v1076_v22  ;;  %v1007_v28 = vadd.f32 %v1006_v21, %v1758_v59 }
 0x16b   :  { %v1008_v58 = vadd.f32 %v1745_v46, %v1007_v28  ;;  %v1140_v29 = vadd.f32 %v1139_v23, %v1077_v25  ;;  %v1082_v46 = vmul.f32 %v1781_v12, %v1781_v12 }
 0x16d   :  { %v1141_v30 = vadd.f32 %v1140_v29, %v1078_v17  ;;  %v1009_v32 = vadd.f32 %v1749_v54, %v1008_v58  ;;  %v1083_v54 = vmul.f32 %v1785_v24, %v1785_v24 }
 0x16f   :  { %v1010_v0 = vadd.f32 %v1009_v32, %v1783_v16  ;;  %v1142_v33 = vadd.f32 %v1141_v30, %v1079_v26 }
 0x171   :  { %v1143_v55 = vadd.f32 %v1142_v33, %v1080_v50  ;;  %v1011_v59 = vadd.f32 %v1010_v0, %v1794_v27 }
 0x173   :  { %v1012_v36 = vadd.f32 %v1781_v12, %v1011_v59  ;;  %v1144_v62 = vadd.f32 %v1143_v55, %v1081_v35 }
 0x175   :  { %v1013_v37 = vadd.f32 %v1785_v24, %v1012_v36  ;;  %v1145_v39 = vadd.f32 %v1144_v62, %v1082_v46 }
 0x177   :  { %v1014_v16 = vrot.slane %v1013_v37, 4  ;;  %v1146_v14 = vadd.f32 %v1145_v39, %v1083_v54 }
 0x179   :  { %v1015_v42 = vadd.f32 %v1014_v16, %v1013_v37  ;;  %v1147_v44 = vrot.slane %v1146_v14, 4 }
 0x17b   :  { %v1016_v48 = vrot.slane %v1015_v42, 2  ;;  %v1148_v20 = vadd.f32 %v1147_v44, %v1146_v14 }
 0x17d   :  { %v1017_v49 = vadd.f32 %v1016_v48, %v1015_v42  ;;  %v1149_v27 = vrot.slane %v1148_v20, 2 }
 0x17f   :  { %v1018_v11 = vrot.slane %v1017_v49, 1  ;;  %v1150_v51 = vadd.f32 %v1149_v27, %v1148_v20 }
 0x181   :  { %v1019_v52 = vadd.f32 %v1018_v11, %v1017_v49  ;;  %v1151_v18 = vrot.slane %v1150_v51, 1 }
 0x183   :  { %v1152_v12 = vadd.f32 %v1151_v18, %v1150_v51  ;;  %1153 = vst [vmem:[%s1922_s3] sm:$0xff] %v1019_v52 }
 0x185   :  { %1154 = vst [vmem:[%s1923_s4] sm:$0xff] %v1152_v12 }

// kernel: basic_block_forward.7
= control target key start
LH: loop header
LB: loop body
LE: loop exit
PB: predicated region body
PF: predicated region fallthrough
CT: control target
= control target key end

     0   :  { %s1351_s0 = inlined_call_operand.vmem [shape: f32[512,128], index: 0, kind: input, shape index: {}]   ;;  %s1352_s1 = inlined_call_operand.vmem [shape: f32[1,128], index: 1, kind: input, shape index: {}]   ;;  %s1353_s2 = inlined_call_operand.vmem [shape: f32[1,128], index: 2, kind: input, shape index: {}]   ;;  %s1354_s3 = inlined_call_operand.vmem [shape: bf16[512,128], index: 3, kind: input, shape index: {}]   ;;  %s1355_s4 = inlined_call_operand.vmem [shape: f32[512,128], index: 4, kind: output, shape index: {}]  }
   0x1   :  { %v17_v0 = vld [vmem:[%s1351_s0] sm:$0xff]  ;;  %v18_v5 = vld [vmem:[%s1351_s0 + $0x8] sm:$0xff]  ;;  %v19_v6 = vld [vmem:[%s1351_s0 + $0x10] sm:$0xff] }
   0x2   :  { %v739_v1 = vld [vmem:[%s1352_s1] ss:$0 sm:$0xff]  ;;  %v677_v11 = vld [vmem:[%s1354_s3 + $0x8] sm:$0xff]   ;;  %v20_v12 = vld [vmem:[%s1351_s0 + $0x18] sm:$0xff] }
   0x3   :  { %v744_v2 = vld [vmem:[%s1353_s2] ss:$0 sm:$0xff]  ;;  %v88_v3 = vmul.f32 %v739_v1, %v17_v0  ;;  %v89_v8 = vmul.f32 %v739_v1, %v18_v5  ;;  %v90_v10 = vmul.f32 %v739_v1, %v19_v6  ;;  %v555_v15 = vunpack.c.l.bf16 %v677_v11  ;;  %v678_v18 = vld [vmem:[%s1354_s3 + $0x10] sm:$0xff]   ;;  %v22_v19 = vld [vmem:[%s1351_s0 + $0x28] sm:$0xff] }
   0x4   :  { %v550_v4 = vld [vmem:[%s1354_s3] sm:$0xff]   ;;  %v91_v16 = vmul.f32 %v739_v1, %v20_v12  ;;  %v556_v17 = vunpack.c.h.bf16 %v677_v11  ;;  %v23_v20 = vld [vmem:[%s1351_s0 + $0x30] sm:$0xff]  ;;  %v559_v24 = vunpack.c.l.bf16 %v678_v18  ;;  %v679_v25 = vld [vmem:[%s1354_s3 + $0x18] sm:$0xff]   ;;  %v93_v28 = vmul.f32 %v739_v1, %v22_v19 }
   0x5   :  { %v551_v7 = vunpack.c.l.bf16 %v550_v4  ;;  %v552_v9 = vunpack.c.h.bf16 %v550_v4  ;;  %v21_v13 = vld [vmem:[%s1351_s0 + $0x20] sm:$0xff]  ;;  %v159_v14 = vadd.f32 %v744_v2, %v88_v3  ;;  %v160_v21 = vadd.f32 %v744_v2, %v89_v8  ;;  %v24_v34 = vld [vmem:[%s1351_s0 + $0x38] sm:$0xff]  ;;  %v26_v45 = vld [vmem:[%s1351_s0 + $0x48] sm:$0xff] }
   0x6   :  { %v161_v22 = vadd.f32 %v744_v2, %v90_v10  ;;  %v92_v23 = vmul.f32 %v739_v1, %v21_v13  ;;  %v162_v27 = vadd.f32 %v744_v2, %v91_v16  ;;  %v560_v29 = vunpack.c.h.bf16 %v678_v18  ;;  %v25_v39 = vld [vmem:[%s1351_s0 + $0x40] sm:$0xff]  ;;  %v27_v50 = vld [vmem:[%s1351_s0 + $0x50] sm:$0xff]  ;;  %v681_v51 = vld [vmem:[%s1354_s3 + $0x28] sm:$0xff]  }
   0x7   :  { %v351_v26 = vadd.f32 %v551_v7, %v159_v14  ;;  %v352_v30 = vadd.f32 %v552_v9, %v160_v21  ;;  %v94_v33 = vmul.f32 %v739_v1, %v23_v20  ;;  %v164_v37 = vadd.f32 %v744_v2, %v93_v28  ;;  %v680_v40 = vld [vmem:[%s1354_s3 + $0x20] sm:$0xff]   ;;  %v28_v56 = vld [vmem:[%s1351_s0 + $0x58] sm:$0xff]  ;;  %v682_v62 = vld [vmem:[%s1354_s3 + $0x30] sm:$0xff]  }
   0x8   :  { %v353_v31 = vadd.f32 %v555_v15, %v161_v22  ;;  %v163_v32 = vadd.f32 %v744_v2, %v92_v23  ;;  %v354_v36 = vadd.f32 %v556_v17, %v162_v27  ;;  %v563_v38 = vunpack.c.l.bf16 %v679_v25  ;;  %v29_v61 = vld [vmem:[%s1351_s0 + $0x60] sm:$0xff]  ;;  %v30_v5 = vld [vmem:[%s1351_s0 + $0x68] sm:$0xff]  ;;  %v31_v14 = vld [vmem:[%s1351_s0 + $0x70] sm:$0xff] }
   0x9   :  { %v415_v35 = vmax.f32 %v351_v26, 0.0  ;;  %v416_v41 = vmax.f32 %v352_v30, 0.0  ;;  %v165_v44 = vadd.f32 %v744_v2, %v94_v33  ;;  %v356_v47 = vadd.f32 %v560_v29, %v164_v37  ;;  %v683_v19 = vld [vmem:[%s1354_s3 + $0x38] sm:$0xff]   ;;  %v33_v29 = vld [vmem:[%s1351_s0 + $0x80] sm:$0xff] }
   0xa   :  { %v417_v42 = vmax.f32 %v353_v31, 0.0  ;;  %v355_v43 = vadd.f32 %v559_v24, %v163_v32  ;;  %v418_v46 = vmax.f32 %v354_v36, 0.0  ;;  %v95_v48 = vmul.f32 %v739_v1, %v24_v34  ;;  %v32_v20 = vld [vmem:[%s1351_s0 + $0x78] sm:$0xff]  ;;  %v684_v30 = vld [vmem:[%s1354_s3 + $0x40] sm:$0xff]  }
   0xb   :  { %479 = vst [vmem:[%s1355_s4] sm:$0xff] %v415_v35  ;;  %v564_v49 = vunpack.c.h.bf16 %v679_v25  ;;  %480 = vst [vmem:[%s1355_s4 + $0x8] sm:$0xff] %v416_v41  ;;  %v357_v53 = vadd.f32 %v563_v38, %v165_v44  ;;  %v96_v54 = vmul.f32 %v739_v1, %v25_v39  ;;  %v567_v55 = vunpack.c.l.bf16 %v680_v40  ;;  %v34_v35 = vld [vmem:[%s1351_s0 + $0x88] sm:$0xff] }
   0xc   :  { %481 = vst [vmem:[%s1355_s4 + $0x10] sm:$0xff] %v417_v42  ;;  %v419_v52 = vmax.f32 %v355_v43, 0.0  ;;  %482 = vst [vmem:[%s1355_s4 + $0x18] sm:$0xff] %v418_v46  ;;  %v420_v57 = vmax.f32 %v356_v47, 0.0  ;;  %v166_v58 = vadd.f32 %v744_v2, %v95_v48  ;;  %v97_v59 = vmul.f32 %v739_v1, %v26_v45  ;;  %v685_v41 = vld [vmem:[%s1354_s3 + $0x48] sm:$0xff]   ;;  %v36_v46 = vld [vmem:[%s1351_s0 + $0x98] sm:$0xff] }
   0xd   :  { %v568_v60 = vunpack.c.h.bf16 %v680_v40  ;;  %v421_v63 = vmax.f32 %v357_v53, 0.0  ;;  %v167_v0 = vadd.f32 %v744_v2, %v96_v54  ;;  %v98_v3 = vmul.f32 %v739_v1, %v27_v50  ;;  %v35_v40 = vld [vmem:[%s1351_s0 + $0x90] sm:$0xff] }
   0xe   :  { %483 = vst [vmem:[%s1355_s4 + $0x20] sm:$0xff] %v419_v52  ;;  %v571_v4 = vunpack.c.l.bf16 %v681_v51  ;;  %484 = vst [vmem:[%s1355_s4 + $0x28] sm:$0xff] %v420_v57  ;;  %v358_v6 = vadd.f32 %v564_v49, %v166_v58  ;;  %v168_v7 = vadd.f32 %v744_v2, %v97_v59  ;;  %v99_v8 = vmul.f32 %v739_v1, %v28_v56  ;;  %v686_v56 = vld [vmem:[%s1354_s3 + $0x50] sm:$0xff]   ;;  %v38_v57 = vld [vmem:[%s1351_s0 + $0xa8] sm:$0xff] }
   0xf   :  { %v572_v9 = vunpack.c.h.bf16 %v681_v51  ;;  %485 = vst [vmem:[%s1355_s4 + $0x30] sm:$0xff] %v421_v63  ;;  %v359_v10 = vadd.f32 %v567_v55, %v167_v0  ;;  %v169_v11 = vadd.f32 %v744_v2, %v98_v3  ;;  %v100_v12 = vmul.f32 %v739_v1, %v29_v61  ;;  %v37_v51 = vld [vmem:[%s1351_s0 + $0xa0] sm:$0xff] }
  0x10   :  { %v575_v13 = vunpack.c.l.bf16 %v682_v62  ;;  %v422_v15 = vmax.f32 %v358_v6, 0.0  ;;  %v360_v16 = vadd.f32 %v568_v60, %v168_v7  ;;  %v170_v17 = vadd.f32 %v744_v2, %v99_v8 }
  0x11   :  { %v101_v18 = vmul.f32 %v739_v1, %v30_v5  ;;  %v423_v21 = vmax.f32 %v359_v10, 0.0  ;;  %v361_v22 = vadd.f32 %v571_v4, %v169_v11  ;;  %v171_v23 = vadd.f32 %v744_v2, %v100_v12  ;;  %v39_v4 = vld [vmem:[%s1351_s0 + $0xb0] sm:$0xff]  ;;  %v40_v10 = vld [vmem:[%s1351_s0 + $0xb8] sm:$0xff] }
  0x12   :  { %v576_v24 = vunpack.c.h.bf16 %v682_v62  ;;  %486 = vst [vmem:[%s1355_s4 + $0x38] sm:$0xff] %v422_v15  ;;  %v424_v25 = vmax.f32 %v360_v16, 0.0  ;;  %v362_v26 = vadd.f32 %v572_v9, %v170_v17  ;;  %v102_v28 = vmul.f32 %v739_v1, %v31_v14  ;;  %v687_v9 = vld [vmem:[%s1354_s3 + $0x58] sm:$0xff]  }
  0x13   :  { %v172_v27 = vadd.f32 %v744_v2, %v101_v18  ;;  %487 = vst [vmem:[%s1355_s4 + $0x40] sm:$0xff] %v423_v21  ;;  %v425_v31 = vmax.f32 %v361_v22, 0.0  ;;  %v363_v32 = vadd.f32 %v575_v13, %v171_v23  ;;  %v579_v33 = vunpack.c.l.bf16 %v683_v19 }
  0x14   :  { %v103_v34 = vmul.f32 %v739_v1, %v32_v20  ;;  %488 = vst [vmem:[%s1355_s4 + $0x48] sm:$0xff] %v424_v25  ;;  %v426_v36 = vmax.f32 %v362_v26, 0.0  ;;  %v173_v38 = vadd.f32 %v744_v2, %v102_v28  ;;  %v580_v39 = vunpack.c.h.bf16 %v683_v19  ;;  %v41_v19 = vld [vmem:[%s1351_s0 + $0xc0] sm:$0xff]  ;;  %v42_v25 = vld [vmem:[%s1351_s0 + $0xc8] sm:$0xff] }
  0x15   :  { %v364_v37 = vadd.f32 %v576_v24, %v172_v27  ;;  %489 = vst [vmem:[%s1355_s4 + $0x50] sm:$0xff] %v425_v31  ;;  %v427_v42 = vmax.f32 %v363_v32, 0.0  ;;  %v104_v44 = vmul.f32 %v739_v1, %v33_v29  ;;  %v583_v45 = vunpack.c.l.bf16 %v684_v30  ;;  %v688_v20 = vld [vmem:[%s1354_s3 + $0x60] sm:$0xff]   ;;  %v689_v31 = vld [vmem:[%s1354_s3 + $0x68] sm:$0xff]  }
  0x16   :  { %v174_v43 = vadd.f32 %v744_v2, %v103_v34  ;;  %490 = vst [vmem:[%s1355_s4 + $0x58] sm:$0xff] %v426_v36  ;;  %v365_v48 = vadd.f32 %v579_v33, %v173_v38  ;;  %v105_v49 = vmul.f32 %v739_v1, %v34_v35  ;;  %v584_v50 = vunpack.c.h.bf16 %v684_v30  ;;  %v43_v30 = vld [vmem:[%s1351_s0 + $0xd0] sm:$0xff]  ;;  %v44_v36 = vld [vmem:[%s1351_s0 + $0xd8] sm:$0xff] }
  0x17   :  { %v428_v47 = vmax.f32 %v364_v37, 0.0  ;;  %491 = vst [vmem:[%s1355_s4 + $0x60] sm:$0xff] %v427_v42  ;;  %v175_v53 = vadd.f32 %v744_v2, %v104_v44  ;;  %v106_v54 = vmul.f32 %v739_v1, %v35_v40  ;;  %v587_v55 = vunpack.c.l.bf16 %v685_v41 }
  0x18   :  { %v366_v52 = vadd.f32 %v580_v39, %v174_v43  ;;  %v429_v58 = vmax.f32 %v365_v48, 0.0  ;;  %v176_v59 = vadd.f32 %v744_v2, %v105_v49  ;;  %v107_v60 = vmul.f32 %v739_v1, %v36_v46  ;;  %v690_v46 = vld [vmem:[%s1354_s3 + $0x70] sm:$0xff]  }
  0x19   :  { %492 = vst [vmem:[%s1355_s4 + $0x68] sm:$0xff] %v428_v47  ;;  %v588_v61 = vunpack.c.h.bf16 %v685_v41  ;;  %v367_v63 = vadd.f32 %v583_v45, %v175_v53  ;;  %v177_v0 = vadd.f32 %v744_v2, %v106_v54  ;;  %v108_v3 = vmul.f32 %v739_v1, %v37_v51  ;;  %v45_v41 = vld [vmem:[%s1351_s0 + $0xe0] sm:$0xff]  ;;  %v46_v47 = vld [vmem:[%s1351_s0 + $0xe8] sm:$0xff] }
  0x1a   :  { %v430_v62 = vmax.f32 %v366_v52, 0.0  ;;  %493 = vst [vmem:[%s1355_s4 + $0x70] sm:$0xff] %v429_v58  ;;  %v368_v5 = vadd.f32 %v584_v50, %v176_v59  ;;  %v178_v6 = vadd.f32 %v744_v2, %v107_v60  ;;  %v591_v7 = vunpack.c.l.bf16 %v686_v56 }
  0x1b   :  { %v109_v8 = vmul.f32 %v739_v1, %v38_v57  ;;  %v431_v11 = vmax.f32 %v367_v63, 0.0  ;;  %v369_v12 = vadd.f32 %v587_v55, %v177_v0  ;;  %v179_v13 = vadd.f32 %v744_v2, %v108_v3 }
  0x1c   :  { %494 = vst [vmem:[%s1355_s4 + $0x78] sm:$0xff] %v430_v62  ;;  %v592_v14 = vunpack.c.h.bf16 %v686_v56  ;;  %v432_v15 = vmax.f32 %v368_v5, 0.0  ;;  %v370_v16 = vadd.f32 %v588_v61, %v178_v6  ;;  %v110_v18 = vmul.f32 %v739_v1, %v39_v4  ;;  %v47_v56 = vld [vmem:[%s1351_s0 + $0xf0] sm:$0xff]  ;;  %v691_v61 = vld [vmem:[%s1354_s3 + $0x78] sm:$0xff]  }
  0x1d   :  { %v180_v17 = vadd.f32 %v744_v2, %v109_v8  ;;  %495 = vst [vmem:[%s1355_s4 + $0x80] sm:$0xff] %v431_v11  ;;  %v433_v21 = vmax.f32 %v369_v12, 0.0  ;;  %v371_v22 = vadd.f32 %v591_v7, %v179_v13  ;;  %v595_v23 = vunpack.c.l.bf16 %v687_v9  ;;  %v48_v62 = vld [vmem:[%s1351_s0 + $0xf8] sm:$0xff] }
  0x1e   :  { %v111_v24 = vmul.f32 %v739_v1, %v40_v10  ;;  %496 = vst [vmem:[%s1355_s4 + $0x88] sm:$0xff] %v432_v15  ;;  %v434_v26 = vmax.f32 %v370_v16, 0.0  ;;  %v181_v28 = vadd.f32 %v744_v2, %v110_v18  ;;  %v596_v29 = vunpack.c.h.bf16 %v687_v9  ;;  %v49_v9 = vld [vmem:[%s1351_s0 + $0x100] sm:$0xff]  ;;  %v50_v15 = vld [vmem:[%s1351_s0 + $0x108] sm:$0xff] }
  0x1f   :  { %v372_v27 = vadd.f32 %v592_v14, %v180_v17  ;;  %497 = vst [vmem:[%s1355_s4 + $0x90] sm:$0xff] %v433_v21  ;;  %v435_v32 = vmax.f32 %v371_v22, 0.0  ;;  %v112_v34 = vmul.f32 %v739_v1, %v41_v19  ;;  %v599_v35 = vunpack.c.l.bf16 %v688_v20  ;;  %v692_v10 = vld [vmem:[%s1354_s3 + $0x80] sm:$0xff]   ;;  %v693_v21 = vld [vmem:[%s1354_s3 + $0x88] sm:$0xff]  }
  0x20   :  { %v182_v33 = vadd.f32 %v744_v2, %v111_v24  ;;  %498 = vst [vmem:[%s1355_s4 + $0x98] sm:$0xff] %v434_v26  ;;  %v373_v38 = vadd.f32 %v595_v23, %v181_v28  ;;  %v113_v39 = vmul.f32 %v739_v1, %v42_v25  ;;  %v600_v40 = vunpack.c.h.bf16 %v688_v20  ;;  %v51_v20 = vld [vmem:[%s1351_s0 + $0x110] sm:$0xff]  ;;  %v52_v26 = vld [vmem:[%s1351_s0 + $0x118] sm:$0xff] }
  0x21   :  { %v436_v37 = vmax.f32 %v372_v27, 0.0  ;;  %499 = vst [vmem:[%s1355_s4 + $0xa0] sm:$0xff] %v435_v32  ;;  %v183_v43 = vadd.f32 %v744_v2, %v112_v34  ;;  %v114_v44 = vmul.f32 %v739_v1, %v43_v30  ;;  %v603_v45 = vunpack.c.l.bf16 %v689_v31 }
  0x22   :  { %v374_v42 = vadd.f32 %v596_v29, %v182_v33  ;;  %v437_v48 = vmax.f32 %v373_v38, 0.0  ;;  %v184_v49 = vadd.f32 %v744_v2, %v113_v39  ;;  %v115_v50 = vmul.f32 %v739_v1, %v44_v36  ;;  %v694_v36 = vld [vmem:[%s1354_s3 + $0x90] sm:$0xff]  }
  0x23   :  { %500 = vst [vmem:[%s1355_s4 + $0xa8] sm:$0xff] %v436_v37  ;;  %v604_v51 = vunpack.c.h.bf16 %v689_v31  ;;  %v375_v53 = vadd.f32 %v599_v35, %v183_v43  ;;  %v185_v54 = vadd.f32 %v744_v2, %v114_v44  ;;  %v116_v55 = vmul.f32 %v739_v1, %v45_v41  ;;  %v53_v31 = vld [vmem:[%s1351_s0 + $0x120] sm:$0xff]  ;;  %v54_v37 = vld [vmem:[%s1351_s0 + $0x128] sm:$0xff] }
  0x24   :  { %v438_v52 = vmax.f32 %v374_v42, 0.0  ;;  %501 = vst [vmem:[%s1355_s4 + $0xb0] sm:$0xff] %v437_v48  ;;  %v376_v57 = vadd.f32 %v600_v40, %v184_v49  ;;  %v186_v58 = vadd.f32 %v744_v2, %v115_v50  ;;  %v607_v59 = vunpack.c.l.bf16 %v690_v46 }
  0x25   :  { %v117_v60 = vmul.f32 %v739_v1, %v46_v47  ;;  %v439_v63 = vmax.f32 %v375_v53, 0.0  ;;  %v377_v0 = vadd.f32 %v603_v45, %v185_v54  ;;  %v187_v3 = vadd.f32 %v744_v2, %v116_v55 }
  0x26   :  { %502 = vst [vmem:[%s1355_s4 + $0xb8] sm:$0xff] %v438_v52  ;;  %v608_v4 = vunpack.c.h.bf16 %v690_v46  ;;  %v440_v5 = vmax.f32 %v376_v57, 0.0  ;;  %v378_v6 = vadd.f32 %v604_v51, %v186_v58  ;;  %v118_v8 = vmul.f32 %v739_v1, %v47_v56  ;;  %v55_v46 = vld [vmem:[%s1351_s0 + $0x130] sm:$0xff]  ;;  %v695_v51 = vld [vmem:[%s1354_s3 + $0x98] sm:$0xff]  }
  0x27   :  { %v188_v7 = vadd.f32 %v744_v2, %v117_v60  ;;  %503 = vst [vmem:[%s1355_s4 + $0xc0] sm:$0xff] %v439_v63  ;;  %v441_v11 = vmax.f32 %v377_v0, 0.0  ;;  %v379_v12 = vadd.f32 %v607_v59, %v187_v3  ;;  %v611_v13 = vunpack.c.l.bf16 %v691_v61  ;;  %v56_v52 = vld [vmem:[%s1351_s0 + $0x138] sm:$0xff] }
  0x28   :  { %v119_v14 = vmul.f32 %v739_v1, %v48_v62  ;;  %504 = vst [vmem:[%s1355_s4 + $0xc8] sm:$0xff] %v440_v5  ;;  %v442_v16 = vmax.f32 %v378_v6, 0.0  ;;  %v189_v18 = vadd.f32 %v744_v2, %v118_v8  ;;  %v612_v19 = vunpack.c.h.bf16 %v691_v61  ;;  %v57_v61 = vld [vmem:[%s1351_s0 + $0x140] sm:$0xff]  ;;  %v58_v5 = vld [vmem:[%s1351_s0 + $0x148] sm:$0xff] }
  0x29   :  { %v380_v17 = vadd.f32 %v608_v4, %v188_v7  ;;  %505 = vst [vmem:[%s1355_s4 + $0xd0] sm:$0xff] %v441_v11  ;;  %v443_v22 = vmax.f32 %v379_v12, 0.0  ;;  %v120_v24 = vmul.f32 %v739_v1, %v49_v9  ;;  %v615_v25 = vunpack.c.l.bf16 %v692_v10  ;;  %v696_v62 = vld [vmem:[%s1354_s3 + $0xa0] sm:$0xff]   ;;  %v697_v11 = vld [vmem:[%s1354_s3 + $0xa8] sm:$0xff]  }
  0x2a   :  { %v190_v23 = vadd.f32 %v744_v2, %v119_v14  ;;  %506 = vst [vmem:[%s1355_s4 + $0xd8] sm:$0xff] %v442_v16  ;;  %v381_v28 = vadd.f32 %v611_v13, %v189_v18  ;;  %v121_v29 = vmul.f32 %v739_v1, %v50_v15  ;;  %v616_v30 = vunpack.c.h.bf16 %v692_v10  ;;  %v59_v10 = vld [vmem:[%s1351_s0 + $0x150] sm:$0xff]  ;;  %v60_v16 = vld [vmem:[%s1351_s0 + $0x158] sm:$0xff] }
  0x2b   :  { %v444_v27 = vmax.f32 %v380_v17, 0.0  ;;  %507 = vst [vmem:[%s1355_s4 + $0xe0] sm:$0xff] %v443_v22  ;;  %v191_v33 = vadd.f32 %v744_v2, %v120_v24  ;;  %v122_v34 = vmul.f32 %v739_v1, %v51_v20  ;;  %v619_v35 = vunpack.c.l.bf16 %v693_v21 }
  0x2c   :  { %v382_v32 = vadd.f32 %v612_v19, %v190_v23  ;;  %v445_v38 = vmax.f32 %v381_v28, 0.0  ;;  %v192_v39 = vadd.f32 %v744_v2, %v121_v29  ;;  %v123_v40 = vmul.f32 %v739_v1, %v52_v26  ;;  %v698_v26 = vld [vmem:[%s1354_s3 + $0xb0] sm:$0xff]  }
  0x2d   :  { %508 = vst [vmem:[%s1355_s4 + $0xe8] sm:$0xff] %v444_v27  ;;  %v620_v41 = vunpack.c.h.bf16 %v693_v21  ;;  %v383_v43 = vadd.f32 %v615_v25, %v191_v33  ;;  %v193_v44 = vadd.f32 %v744_v2, %v122_v34  ;;  %v124_v45 = vmul.f32 %v739_v1, %v53_v31  ;;  %v61_v21 = vld [vmem:[%s1351_s0 + $0x160] sm:$0xff]  ;;  %v62_v27 = vld [vmem:[%s1351_s0 + $0x168] sm:$0xff] }
  0x2e   :  { %v446_v42 = vmax.f32 %v382_v32, 0.0  ;;  %509 = vst [vmem:[%s1355_s4 + $0xf0] sm:$0xff] %v445_v38  ;;  %v384_v47 = vadd.f32 %v616_v30, %v192_v39  ;;  %v194_v48 = vadd.f32 %v744_v2, %v123_v40  ;;  %v623_v49 = vunpack.c.l.bf16 %v694_v36 }
  0x2f   :  { %v125_v50 = vmul.f32 %v739_v1, %v54_v37  ;;  %v447_v53 = vmax.f32 %v383_v43, 0.0  ;;  %v385_v54 = vadd.f32 %v619_v35, %v193_v44  ;;  %v195_v55 = vadd.f32 %v744_v2, %v124_v45 }
  0x30   :  { %510 = vst [vmem:[%s1355_s4 + $0xf8] sm:$0xff] %v446_v42  ;;  %v624_v56 = vunpack.c.h.bf16 %v694_v36  ;;  %v448_v57 = vmax.f32 %v384_v47, 0.0  ;;  %v386_v58 = vadd.f32 %v620_v41, %v194_v48  ;;  %v126_v60 = vmul.f32 %v739_v1, %v55_v46  ;;  %v63_v36 = vld [vmem:[%s1351_s0 + $0x170] sm:$0xff]  ;;  %v699_v41 = vld [vmem:[%s1354_s3 + $0xb8] sm:$0xff]  }
  0x31   :  { %v196_v59 = vadd.f32 %v744_v2, %v125_v50  ;;  %511 = vst [vmem:[%s1355_s4 + $0x100] sm:$0xff] %v447_v53  ;;  %v449_v63 = vmax.f32 %v385_v54, 0.0  ;;  %v387_v0 = vadd.f32 %v623_v49, %v195_v55  ;;  %v627_v3 = vunpack.c.l.bf16 %v695_v51  ;;  %v64_v42 = vld [vmem:[%s1351_s0 + $0x178] sm:$0xff] }
  0x32   :  { %v127_v4 = vmul.f32 %v739_v1, %v56_v52  ;;  %512 = vst [vmem:[%s1355_s4 + $0x108] sm:$0xff] %v448_v57  ;;  %v450_v6 = vmax.f32 %v386_v58, 0.0  ;;  %v197_v8 = vadd.f32 %v744_v2, %v126_v60  ;;  %v628_v9 = vunpack.c.h.bf16 %v695_v51  ;;  %v65_v51 = vld [vmem:[%s1351_s0 + $0x180] sm:$0xff]  ;;  %v66_v57 = vld [vmem:[%s1351_s0 + $0x188] sm:$0xff] }
  0x33   :  { %v388_v7 = vadd.f32 %v624_v56, %v196_v59  ;;  %513 = vst [vmem:[%s1355_s4 + $0x110] sm:$0xff] %v449_v63  ;;  %v451_v12 = vmax.f32 %v387_v0, 0.0  ;;  %v128_v14 = vmul.f32 %v739_v1, %v57_v61  ;;  %v631_v15 = vunpack.c.l.bf16 %v696_v62  ;;  %v700_v52 = vld [vmem:[%s1354_s3 + $0xc0] sm:$0xff]   ;;  %v701_v63 = vld [vmem:[%s1354_s3 + $0xc8] sm:$0xff]  }
  0x34   :  { %v198_v13 = vadd.f32 %v744_v2, %v127_v4  ;;  %514 = vst [vmem:[%s1355_s4 + $0x118] sm:$0xff] %v450_v6  ;;  %v389_v18 = vadd.f32 %v627_v3, %v197_v8  ;;  %v129_v19 = vmul.f32 %v739_v1, %v58_v5  ;;  %v632_v20 = vunpack.c.h.bf16 %v696_v62  ;;  %v67_v62 = vld [vmem:[%s1351_s0 + $0x190] sm:$0xff]  ;;  %v68_v6 = vld [vmem:[%s1351_s0 + $0x198] sm:$0xff] }
  0x35   :  { %v452_v17 = vmax.f32 %v388_v7, 0.0  ;;  %515 = vst [vmem:[%s1355_s4 + $0x120] sm:$0xff] %v451_v12  ;;  %v199_v23 = vadd.f32 %v744_v2, %v128_v14  ;;  %v130_v24 = vmul.f32 %v739_v1, %v59_v10  ;;  %v635_v25 = vunpack.c.l.bf16 %v697_v11 }
  0x36   :  { %v390_v22 = vadd.f32 %v628_v9, %v198_v13  ;;  %v453_v28 = vmax.f32 %v389_v18, 0.0  ;;  %v200_v29 = vadd.f32 %v744_v2, %v129_v19  ;;  %v131_v30 = vmul.f32 %v739_v1, %v60_v16  ;;  %v702_v16 = vld [vmem:[%s1354_s3 + $0xd0] sm:$0xff]  }
  0x37   :  { %516 = vst [vmem:[%s1355_s4 + $0x128] sm:$0xff] %v452_v17  ;;  %v636_v31 = vunpack.c.h.bf16 %v697_v11  ;;  %v391_v33 = vadd.f32 %v631_v15, %v199_v23  ;;  %v201_v34 = vadd.f32 %v744_v2, %v130_v24  ;;  %v132_v35 = vmul.f32 %v739_v1, %v61_v21  ;;  %v69_v11 = vld [vmem:[%s1351_s0 + $0x1a0] sm:$0xff]  ;;  %v70_v17 = vld [vmem:[%s1351_s0 + $0x1a8] sm:$0xff] }
  0x38   :  { %v454_v32 = vmax.f32 %v390_v22, 0.0  ;;  %517 = vst [vmem:[%s1355_s4 + $0x130] sm:$0xff] %v453_v28  ;;  %v392_v37 = vadd.f32 %v632_v20, %v200_v29  ;;  %v202_v38 = vadd.f32 %v744_v2, %v131_v30  ;;  %v639_v39 = vunpack.c.l.bf16 %v698_v26 }
  0x39   :  { %v133_v40 = vmul.f32 %v739_v1, %v62_v27  ;;  %v455_v43 = vmax.f32 %v391_v33, 0.0  ;;  %v393_v44 = vadd.f32 %v635_v25, %v201_v34  ;;  %v203_v45 = vadd.f32 %v744_v2, %v132_v35 }
  0x3a   :  { %518 = vst [vmem:[%s1355_s4 + $0x138] sm:$0xff] %v454_v32  ;;  %v640_v46 = vunpack.c.h.bf16 %v698_v26  ;;  %v456_v47 = vmax.f32 %v392_v37, 0.0  ;;  %v394_v48 = vadd.f32 %v636_v31, %v202_v38  ;;  %v134_v50 = vmul.f32 %v739_v1, %v63_v36  ;;  %v71_v26 = vld [vmem:[%s1351_s0 + $0x1b0] sm:$0xff]  ;;  %v703_v31 = vld [vmem:[%s1354_s3 + $0xd8] sm:$0xff]  }
  0x3b   :  { %v204_v49 = vadd.f32 %v744_v2, %v133_v40  ;;  %519 = vst [vmem:[%s1355_s4 + $0x140] sm:$0xff] %v455_v43  ;;  %v457_v53 = vmax.f32 %v393_v44, 0.0  ;;  %v395_v54 = vadd.f32 %v639_v39, %v203_v45  ;;  %v643_v55 = vunpack.c.l.bf16 %v699_v41  ;;  %v72_v32 = vld [vmem:[%s1351_s0 + $0x1b8] sm:$0xff] }
  0x3c   :  { %v135_v56 = vmul.f32 %v739_v1, %v64_v42  ;;  %520 = vst [vmem:[%s1355_s4 + $0x148] sm:$0xff] %v456_v47  ;;  %v458_v58 = vmax.f32 %v394_v48, 0.0  ;;  %v205_v60 = vadd.f32 %v744_v2, %v134_v50  ;;  %v644_v61 = vunpack.c.h.bf16 %v699_v41  ;;  %v73_v41 = vld [vmem:[%s1351_s0 + $0x1c0] sm:$0xff]  ;;  %v74_v47 = vld [vmem:[%s1351_s0 + $0x1c8] sm:$0xff] }
  0x3d   :  { %v396_v59 = vadd.f32 %v640_v46, %v204_v49  ;;  %521 = vst [vmem:[%s1355_s4 + $0x150] sm:$0xff] %v457_v53  ;;  %v459_v0 = vmax.f32 %v395_v54, 0.0  ;;  %v136_v4 = vmul.f32 %v739_v1, %v65_v51  ;;  %v647_v5 = vunpack.c.l.bf16 %v700_v52  ;;  %v704_v42 = vld [vmem:[%s1354_s3 + $0xe0] sm:$0xff]   ;;  %v705_v53 = vld [vmem:[%s1354_s3 + $0xe8] sm:$0xff]  }
  0x3e   :  { %v206_v3 = vadd.f32 %v744_v2, %v135_v56  ;;  %522 = vst [vmem:[%s1355_s4 + $0x158] sm:$0xff] %v458_v58  ;;  %v397_v8 = vadd.f32 %v643_v55, %v205_v60  ;;  %v137_v9 = vmul.f32 %v739_v1, %v66_v57  ;;  %v648_v10 = vunpack.c.h.bf16 %v700_v52  ;;  %v75_v52 = vld [vmem:[%s1351_s0 + $0x1d0] sm:$0xff]  ;;  %v76_v58 = vld [vmem:[%s1351_s0 + $0x1d8] sm:$0xff] }
  0x3f   :  { %v460_v7 = vmax.f32 %v396_v59, 0.0  ;;  %523 = vst [vmem:[%s1355_s4 + $0x160] sm:$0xff] %v459_v0  ;;  %v207_v13 = vadd.f32 %v744_v2, %v136_v4  ;;  %v138_v14 = vmul.f32 %v739_v1, %v67_v62  ;;  %v651_v15 = vunpack.c.l.bf16 %v701_v63 }
  0x40   :  { %v398_v12 = vadd.f32 %v644_v61, %v206_v3  ;;  %v461_v18 = vmax.f32 %v397_v8, 0.0  ;;  %v208_v19 = vadd.f32 %v744_v2, %v137_v9  ;;  %v139_v20 = vmul.f32 %v739_v1, %v68_v6  ;;  %v706_v6 = vld [vmem:[%s1354_s3 + $0xf0] sm:$0xff]  }
  0x41   :  { %524 = vst [vmem:[%s1355_s4 + $0x168] sm:$0xff] %v460_v7  ;;  %v652_v21 = vunpack.c.h.bf16 %v701_v63  ;;  %v399_v23 = vadd.f32 %v647_v5, %v207_v13  ;;  %v209_v24 = vadd.f32 %v744_v2, %v138_v14  ;;  %v140_v25 = vmul.f32 %v739_v1, %v69_v11  ;;  %v77_v63 = vld [vmem:[%s1351_s0 + $0x1e0] sm:$0xff]  ;;  %v78_v7 = vld [vmem:[%s1351_s0 + $0x1e8] sm:$0xff] }
  0x42   :  { %v462_v22 = vmax.f32 %v398_v12, 0.0  ;;  %525 = vst [vmem:[%s1355_s4 + $0x170] sm:$0xff] %v461_v18  ;;  %v400_v27 = vadd.f32 %v648_v10, %v208_v19  ;;  %v210_v28 = vadd.f32 %v744_v2, %v139_v20  ;;  %v655_v29 = vunpack.c.l.bf16 %v702_v16 }
  0x43   :  { %v141_v30 = vmul.f32 %v739_v1, %v70_v17  ;;  %v463_v33 = vmax.f32 %v399_v23, 0.0  ;;  %v401_v34 = vadd.f32 %v651_v15, %v209_v24  ;;  %v211_v35 = vadd.f32 %v744_v2, %v140_v25 }
  0x44   :  { %526 = vst [vmem:[%s1355_s4 + $0x178] sm:$0xff] %v462_v22  ;;  %v656_v36 = vunpack.c.h.bf16 %v702_v16  ;;  %v464_v37 = vmax.f32 %v400_v27, 0.0  ;;  %v402_v38 = vadd.f32 %v652_v21, %v210_v28  ;;  %v142_v40 = vmul.f32 %v739_v1, %v71_v26  ;;  %v79_v16 = vld [vmem:[%s1351_s0 + $0x1f0] sm:$0xff]  ;;  %v707_v21 = vld [vmem:[%s1354_s3 + $0xf8] sm:$0xff]  }
  0x45   :  { %v212_v39 = vadd.f32 %v744_v2, %v141_v30  ;;  %527 = vst [vmem:[%s1355_s4 + $0x180] sm:$0xff] %v463_v33  ;;  %v465_v43 = vmax.f32 %v401_v34, 0.0  ;;  %v403_v44 = vadd.f32 %v655_v29, %v211_v35  ;;  %v659_v45 = vunpack.c.l.bf16 %v703_v31  ;;  %v80_v22 = vld [vmem:[%s1351_s0 + $0x1f8] sm:$0xff] }
  0x46   :  { %v143_v46 = vmul.f32 %v739_v1, %v72_v32  ;;  %528 = vst [vmem:[%s1355_s4 + $0x188] sm:$0xff] %v464_v37  ;;  %v466_v48 = vmax.f32 %v402_v38, 0.0  ;;  %v213_v50 = vadd.f32 %v744_v2, %v142_v40  ;;  %v660_v51 = vunpack.c.h.bf16 %v703_v31 }
  0x47   :  { %v404_v49 = vadd.f32 %v656_v36, %v212_v39  ;;  %529 = vst [vmem:[%s1355_s4 + $0x190] sm:$0xff] %v465_v43  ;;  %v467_v54 = vmax.f32 %v403_v44, 0.0  ;;  %v144_v56 = vmul.f32 %v739_v1, %v73_v41  ;;  %v663_v57 = vunpack.c.l.bf16 %v704_v42 }
  0x48   :  { %v214_v55 = vadd.f32 %v744_v2, %v143_v46  ;;  %530 = vst [vmem:[%s1355_s4 + $0x198] sm:$0xff] %v466_v48  ;;  %v405_v60 = vadd.f32 %v659_v45, %v213_v50  ;;  %v145_v61 = vmul.f32 %v739_v1, %v74_v47  ;;  %v664_v62 = vunpack.c.h.bf16 %v704_v42 }
  0x49   :  { %v468_v59 = vmax.f32 %v404_v49, 0.0  ;;  %531 = vst [vmem:[%s1355_s4 + $0x1a0] sm:$0xff] %v467_v54  ;;  %v215_v3 = vadd.f32 %v744_v2, %v144_v56  ;;  %v146_v4 = vmul.f32 %v739_v1, %v75_v52  ;;  %v667_v5 = vunpack.c.l.bf16 %v705_v53 }
  0x4a   :  { %v406_v0 = vadd.f32 %v660_v51, %v214_v55  ;;  %v469_v8 = vmax.f32 %v405_v60, 0.0  ;;  %v216_v9 = vadd.f32 %v744_v2, %v145_v61  ;;  %v147_v10 = vmul.f32 %v739_v1, %v76_v58 }
  0x4b   :  { %532 = vst [vmem:[%s1355_s4 + $0x1a8] sm:$0xff] %v468_v59  ;;  %v668_v11 = vunpack.c.h.bf16 %v705_v53  ;;  %v407_v13 = vadd.f32 %v663_v57, %v215_v3  ;;  %v217_v14 = vadd.f32 %v744_v2, %v146_v4  ;;  %v148_v15 = vmul.f32 %v739_v1, %v77_v63 }
  0x4c   :  { %v470_v12 = vmax.f32 %v406_v0, 0.0  ;;  %533 = vst [vmem:[%s1355_s4 + $0x1b0] sm:$0xff] %v469_v8  ;;  %v408_v17 = vadd.f32 %v664_v62, %v216_v9  ;;  %v218_v18 = vadd.f32 %v744_v2, %v147_v10  ;;  %v671_v19 = vunpack.c.l.bf16 %v706_v6 }
  0x4d   :  { %v149_v20 = vmul.f32 %v739_v1, %v78_v7  ;;  %v471_v23 = vmax.f32 %v407_v13, 0.0  ;;  %v409_v24 = vadd.f32 %v667_v5, %v217_v14  ;;  %v219_v25 = vadd.f32 %v744_v2, %v148_v15 }
  0x4e   :  { %534 = vst [vmem:[%s1355_s4 + $0x1b8] sm:$0xff] %v470_v12  ;;  %v672_v26 = vunpack.c.h.bf16 %v706_v6  ;;  %v472_v27 = vmax.f32 %v408_v17, 0.0  ;;  %v410_v28 = vadd.f32 %v668_v11, %v218_v18  ;;  %v150_v30 = vmul.f32 %v739_v1, %v79_v16 }
  0x4f   :  { %v220_v29 = vadd.f32 %v744_v2, %v149_v20  ;;  %535 = vst [vmem:[%s1355_s4 + $0x1c0] sm:$0xff] %v471_v23  ;;  %v473_v31 = vmax.f32 %v409_v24, 0.0  ;;  %v411_v32 = vadd.f32 %v671_v19, %v219_v25  ;;  %v675_v33 = vunpack.c.l.bf16 %v707_v21 }
  0x50   :  { %v151_v34 = vmul.f32 %v739_v1, %v80_v22  ;;  %536 = vst [vmem:[%s1355_s4 + $0x1c8] sm:$0xff] %v472_v27  ;;  %v474_v35 = vmax.f32 %v410_v28, 0.0  ;;  %v221_v37 = vadd.f32 %v744_v2, %v150_v30  ;;  %v676_v38 = vunpack.c.h.bf16 %v707_v21 }
  0x51   :  { %v412_v36 = vadd.f32 %v672_v26, %v220_v29  ;;  %537 = vst [vmem:[%s1355_s4 + $0x1d0] sm:$0xff] %v473_v31  ;;  %v475_v39 = vmax.f32 %v411_v32, 0.0 }
  0x52   :  { %v222_v40 = vadd.f32 %v744_v2, %v151_v34  ;;  %538 = vst [vmem:[%s1355_s4 + $0x1d8] sm:$0xff] %v474_v35  ;;  %v413_v41 = vadd.f32 %v675_v33, %v221_v37 }
  0x53   :  { %v476_v1 = vmax.f32 %v412_v36, 0.0  ;;  %539 = vst [vmem:[%s1355_s4 + $0x1e0] sm:$0xff] %v475_v39 }
  0x54   :  { %v414_v42 = vadd.f32 %v676_v38, %v222_v40  ;;  %v477_v43 = vmax.f32 %v413_v41, 0.0 }
  0x55   :  { %540 = vst [vmem:[%s1355_s4 + $0x1e8] sm:$0xff] %v476_v1 }
  0x56   :  { %v478_v44 = vmax.f32 %v414_v42, 0.0  ;;  %541 = vst [vmem:[%s1355_s4 + $0x1f0] sm:$0xff] %v477_v43 }
  0x58   :  { %542 = vst [vmem:[%s1355_s4 + $0x1f8] sm:$0xff] %v478_v44 }

</bundles_post_ra>
